<compile_context>
chip_gen: v7x
topology: tpu7x:2x2x1
jax: 0.10.0
libtpu: 0.0.40
codegen_flags: <defaults>
</compile_context>

<pallas_src>
import functools
import math

import jax
import jax.numpy as jnp
from jax import lax
from jax.experimental import pallas as pl
from jax.experimental.pallas import tpu as pltpu

_MIB = 1024 * 1024


# --------------------------------------------------------------------------
# Tiling / VMEM helpers
# --------------------------------------------------------------------------
def _cin_batch_tiling(batch, embed_dim, target=128):
    """CIN batch tile `tb` and padded batch `bp`.

    Keep tb ~128: the D-pooling matmul costs tb*H*(tb*D) MACs (quadratic in tb)
    vs. linear for the real layer matmul.  When grid > 1 we need
    tb % 8 == 0 and (tb * embed_dim) % 128 == 0 (lane-dense CIN blocks).
    """
    if batch <= target:
        return batch, batch
    quant = max(8, 128 // math.gcd(128, embed_dim))
    tb = max(quant, (target // quant) * quant)
    bp = ((batch + tb - 1) // tb) * tb
    assert tb % 8 == 0 and (tb * embed_dim) % 128 == 0, (tb, embed_dim)
    return tb, bp


def _head_batch_tile(bp, target=1024):
    """DNN-head batch tile, decoupled from (and much larger than) the CIN tile:
    per-step head compute is tiny, so fewer/larger grid steps amortize the
    ~0.35us per-step overhead and turn narrow DMAs into fewer, larger ones."""
    if bp <= target:
        return bp
    for cand in (target, 512, 256, 128, 64, 32, 16, 8):
        if bp % cand == 0:
            return cand
    return bp


def _vmem_limit(working_set_bytes):
    """Scoped-VMEM request derived from actual block sizes (x2 for double
    buffering + headroom), floored at the 32 MiB default and capped at 48 MiB so
    the kernel always fits v7x's 64 MiB physical VMEM (v5e/v6e have 128 MiB)."""
    return int(min(48 * _MIB, max(32 * _MIB, 2 * working_set_bytes + 4 * _MIB)))


# --------------------------------------------------------------------------
# Fused CIN kernel: both CIN layers + embed-dim pooling + cin_logits projection
#
# torch semantics per layer:
#   y[b,h,d] = sum_{i,j} W[h, i*Fk + j] * x0[b,i,d] * xk[b,j,d]
# In field-first lane-dense layout x[i, b*D + d]:
#   z[i*Fk+j, n] = x0[i, n] * xk[j, n]
#   y            = W_bf16 @ z_bf16                 (MXU, f32 accumulation)
#   pooled       = y_bf16 @ pool_T_bf16            (MXU; pool_T built from iotas)
#   logit[0, b] += w_cinlog[layer slice] @ pooled  (tiny M=1 matmul, f32)
# --------------------------------------------------------------------------
def _cin_fused_kernel(x0_ref, wlog_ref, *rest, embed_dim):
    *w_refs, out_ref = rest
    x0 = x0_ref[...]                               # (F0, tb*D) f32
    n = x0.shape[1]
    tb = n // embed_dim

    # {0,1} pooling matrix built in-kernel (no HBM DMA; bf16 is exact for {0,1}):
    # pool_t[b*D + d, b] = 1
    row = lax.broadcasted_iota(jnp.int32, (n, tb), 0)
    col = lax.broadcasted_iota(jnp.int32, (n, tb), 1)
    lo = col * embed_dim
    pool_t = jnp.where((row >= lo) & (row < lo + embed_dim),
                       1.0, 0.0).astype(jnp.bfloat16)           # (tb*D, tb)

    h = x0
    logit = jnp.zeros((1, tb), jnp.float32)
    off = 0
    for w_ref in w_refs:
        w = w_ref[...]                                          # (H, F0*Fk) bf16
        # outer product, flattened with m = i*Fk + j (matches torch view order)
        z = (x0[:, None, :] * h[None, :, :]).reshape(-1, n)     # (F0*Fk, tb*D) f32
        y = jnp.dot(w, z.astype(jnp.bfloat16),
                    preferred_element_type=jnp.float32)         # (H, tb*D) f32
        # fused sum-pool over embed_dim, emitted directly as (H, tb) — no transpose
        pooled = jnp.dot(y.astype(jnp.bfloat16), pool_t,
                         preferred_element_type=jnp.float32)    # (H, tb) f32
        hk = w.shape[0]
        # fused cin_logits slice: the (B, 256) pooled tensor never leaves VMEM
        logit = logit + jnp.dot(wlog_ref[:, off:off + hk], pooled,
                                preferred_element_type=jnp.float32)
        off += hk
        h = y
    out_ref[...] = logit


def cin_fused(x0_flat, wlog_row, cin_ws_bf16, *, tb, bp, embed_dim):
    f0 = x0_flat.shape[0]
    n = tb * embed_dim
    h_total = int(wlog_row.shape[1])
    grid = (bp // tb,)

    in_specs = ([pl.BlockSpec((f0, n), lambda b: (0, b)),
                 pl.BlockSpec(wlog_row.shape, lambda b: (0, 0))]
                + [pl.BlockSpec(w.shape, lambda b: (0, 0)) for w in cin_ws_bf16])

    h_max = max(int(w.shape[0]) for w in cin_ws_bf16)
    k_max = max(int(w.shape[1]) for w in cin_ws_bf16)
    work = (f0 * n * 4                                  # x0 block (f32)
            + sum(int(w.size) * 2 for w in cin_ws_bf16) # bf16 filter weights
            + h_total * 4 + tb * 4                      # wlog row + out block
            + k_max * n * (4 + 2)                       # z (f32 + bf16 copy)
            + h_max * n * (4 + 2)                       # y (f32 + bf16 copy)
            + n * tb * 2                                # in-kernel pool_t (bf16)
            + h_max * tb * 4)                           # pooled

    kernel = functools.partial(_cin_fused_kernel, embed_dim=embed_dim)
    return pl.pallas_call(
        kernel,
        out_shape=jax.ShapeDtypeStruct((1, bp), jnp.float32),
        grid_spec=pltpu.PrefetchScalarGridSpec(
            num_scalar_prefetch=0,
            grid=grid,
            in_specs=in_specs,
            out_specs=pl.BlockSpec((1, tb), lambda b: (0, b))),
        compiler_params=pltpu.CompilerParams(
            dimension_semantics=("parallel",),
            vmem_limit_bytes=_vmem_limit(work)),
    )(x0_flat, wlog_row, *cin_ws_bf16)


# --------------------------------------------------------------------------
# Fused DNN tower + consolidated logit heads
#   DNN: Linear->ReLU->LayerNorm->Linear->ReLU->LayerNorm->Linear(64,1)->ReLU
#   (LayerNorm with default torch params: gamma=1, beta=0, eps=1e-5, biased var)
#   All other logits (linear dense, linear sparse sum, CIN logit, biases) arrive
#   pre-packed in `extras` and reduce with a single weighted lane sum.
# --------------------------------------------------------------------------
def _dnn_head_kernel(x_ref, w1_ref, b1_ref, w2_ref, b2_ref, w3_ref, b3_ref,
                     extras_ref, wex_ref, out_ref):
    def ln(h, eps=1e-5):
        mu = jnp.mean(h, axis=-1, keepdims=True)
        var = jnp.mean((h - mu) ** 2, axis=-1, keepdims=True)
        return (h - mu) * lax.rsqrt(var + eps)

    h = jnp.dot(x_ref[...], w1_ref[...],
                preferred_element_type=jnp.float32) + b1_ref[...]      # bf16 x bf16
    h = ln(jnp.maximum(h, 0.0))
    h = jnp.dot(h.astype(jnp.bfloat16), w2_ref[...],
                preferred_element_type=jnp.float32) + b2_ref[...]      # bf16 x bf16
    h = ln(jnp.maximum(h, 0.0))
    # final Linear(64, 1) + ReLU as a VPU reduction (avoids an N=1 MXU pass)
    dnn_logit = jnp.maximum(
        jnp.sum(h * w3_ref[...], axis=-1, keepdims=True) + b3_ref[...], 0.0)
    # linear dense logit + linear sparse sum + CIN logit + folded biases
    extras_logit = jnp.sum(extras_ref[...] * wex_ref[...], axis=-1, keepdims=True)
    out_ref[...] = dnn_logit + extras_logit


def dnn_head(dnn_x, w1, b1, w2, b2, w3_row, b3, extras, wex_row, *, tb, bp):
    grid = (bp // tb,)

    def per_batch(a):
        return pl.BlockSpec((tb,) + a.shape[1:],
                            lambda b: (b,) + (0,) * (a.ndim - 1))

    def replicated(a):
        return pl.BlockSpec(a.shape, lambda b: (0,) * a.ndim)

    args = (dnn_x, w1, b1, w2, b2, w3_row, b3, extras, wex_row)
    batched = {0, 7}
    in_specs = [per_batch(a) if i in batched else replicated(a)
                for i, a in enumerate(args)]

    rep_bytes = sum(int(a.size) * a.dtype.itemsize
                    for i, a in enumerate(args) if i not in batched)
    per_batch_bytes = tb * (int(dnn_x.shape[1]) * dnn_x.dtype.itemsize
                            + int(extras.shape[1]) * extras.dtype.itemsize + 4)
    temp_bytes = tb * (int(w1.shape[1]) + int(w2.shape[1])) * 4
    work = rep_bytes + per_batch_bytes + temp_bytes

    return pl.pallas_call(
        _dnn_head_kernel,
        out_shape=jax.ShapeDtypeStruct((bp, 1), jnp.float32),
        grid_spec=pltpu.PrefetchScalarGridSpec(
            num_scalar_prefetch=0,
            grid=grid,
            in_specs=in_specs,
            out_specs=pl.BlockSpec((tb, 1), lambda b: (b, 0))),
        compiler_params=pltpu.CompilerParams(
            dimension_semantics=("parallel",),
            vmem_limit_bytes=_vmem_limit(work)),
    )(*args)


# --------------------------------------------------------------------------
# Parameter setup (deterministic xavier-uniform-style init)
# --------------------------------------------------------------------------
def xavier(key, shape, fan_in, fan_out):
    limit = (6.0 / (fan_in + fan_out)) ** 0.5
    return jax.random.uniform(key, shape, jnp.float32, -limit, limit)


def make_params(key, *, n_lin_sparse, lin_vocab, dense_dim, sparse_dim,
                embed_dim, dnn_vocab, cin_hidden=(128, 128)):
    keys = iter(jax.random.split(key, 64))
    p = {}
    # linear embeddings, embed_dim = 1 (logit embeddings)
    p["lin_emb"] = [xavier(next(keys), (lin_vocab, 1), lin_vocab, 1)
                    for _ in range(n_lin_sparse)]
    # linear dense logit: Linear(dense_dim, 1)
    p["w_lin"] = xavier(next(keys), (dense_dim, 1), dense_dim, 1)
    p["b_lin"] = jnp.zeros((1, 1), jnp.float32)
    # DNN embeddings
    p["dnn_emb"] = [xavier(next(keys), (dnn_vocab, embed_dim), dnn_vocab, embed_dim)
                    for _ in range(sparse_dim)]
    # CIN filter weights: torch shape (H, F0*Fk, 1) -> stored as (H, F0*Fk)
    field_nums = [sparse_dim] + list(cin_hidden)
    p["cin_W"] = [
        xavier(next(keys), (field_nums[i + 1], field_nums[0] * field_nums[i]),
               field_nums[0] * field_nums[i], field_nums[i + 1])
        for i in range(len(field_nums) - 1)
    ]
    # cin_logits: Linear(256, 1)
    p["w_cinlog"] = xavier(next(keys), (sum(cin_hidden), 1), sum(cin_hidden), 1)
    p["b_cinlog"] = jnp.zeros((1, 1), jnp.float32)
    # DNN tower
    in_dim = dense_dim + sparse_dim * embed_dim
    p["w1"] = xavier(next(keys), (in_dim, 128), in_dim, 128)
    p["b1"] = jnp.zeros((1, 128), jnp.float32)
    p["w2"] = xavier(next(keys), (128, 64), 128, 64)
    p["b2"] = jnp.zeros((1, 64), jnp.float32)
    p["w3"] = xavier(next(keys), (64, 1), 64, 1)
    p["b3"] = jnp.zeros((1, 1), jnp.float32)
    return p


# --------------------------------------------------------------------------
# Full forward (Pallas kernels for the heavy math, JAX glue for gathers/concats)
# --------------------------------------------------------------------------
def xdeepfm_forward(p, linear_dense, linear_sparse_idx, dnn_dense, dnn_sparse_idx,
                    *, cin_tb_target=128, head_tb_target=1024):
    batch = linear_dense.shape[0]
    embed_dim = p["dnn_emb"][0].shape[1]
    f0 = len(p["dnn_emb"])
    n_lin = len(p["lin_emb"])

    # TODO(synk): embedding gathers stay in plain JAX (tiny per-feature tables, no
    # clean/profitable Pallas DMA-gather equivalent at these sizes).
    lin_emb = jnp.concatenate(
        [p["lin_emb"][i][linear_sparse_idx[:, i]] for i in range(n_lin)],
        axis=1)                                                     # (B, n_lin)
    dnn_emb_list = [p["dnn_emb"][i][dnn_sparse_idx[:, i]] for i in range(f0)]
    cin_fields = jnp.stack(dnn_emb_list, axis=0)                    # (F0, B, D)
    dnn_sparse = jnp.concatenate(dnn_emb_list, axis=1)              # (B, F0*D)
    dnn_input = jnp.concatenate([dnn_dense, dnn_sparse], axis=1)    # (B, in_dim)

    tb_cin, bp = _cin_batch_tiling(batch, embed_dim, cin_tb_target)
    pad = bp - batch
    if pad:
        cin_fields = jnp.pad(cin_fields, ((0, 0), (0, pad), (0, 0)))
        dnn_input = jnp.pad(dnn_input, ((0, pad), (0, 0)))
        linear_dense = jnp.pad(linear_dense, ((0, pad), (0, 0)))
        lin_emb = jnp.pad(lin_emb, ((0, pad), (0, 0)))

    # lane-dense field-first CIN layout: x0[i, b*D + d] = cin_input[b, i, d]
    x0_flat = cin_fields.reshape(f0, bp * embed_dim)
    wlog_row = p["w_cinlog"].reshape(1, -1)
    cin_ws_bf16 = [w.astype(jnp.bfloat16) for w in p["cin_W"]]      # one-time cast

    # Fused CIN (both layers + D-pooling + cin_logits projection) -> (1, Bp)
    cin_logit_raw = cin_fused(x0_flat, wlog_row, cin_ws_bf16,
                              tb=tb_cin, bp=bp, embed_dim=embed_dim)
    cin_logit_col = cin_logit_raw.T                                 # (Bp, 1) tiny

    # Pack all small per-batch head inputs into one lane-dense array; the linear
    # and CIN logit biases fold into the weight of a constant-ones column.
    extras = jnp.concatenate(
        [linear_dense, lin_emb, cin_logit_col,
         jnp.ones((bp, 1), jnp.float32)], axis=1)                   # (Bp, d+n_lin+2)
    wex_row = jnp.concatenate(
        [p["w_lin"].reshape(-1),
         jnp.ones((n_lin,), jnp.float32),
         jnp.ones((1,), jnp.float32),
         (p["b_lin"] + p["b_cinlog"]).reshape(-1)]).reshape(1, -1)

    tb_head = _head_batch_tile(bp, head_tb_target)
    out = dnn_head(dnn_input.astype(jnp.bfloat16),
                   p["w1"].astype(jnp.bfloat16), p["b1"],
                   p["w2"].astype(jnp.bfloat16), p["b2"],
                   p["w3"].reshape(1, -1), p["b3"],
                   extras, wex_row, tb=tb_head, bp=bp)
    return out[:batch]


# --------------------------------------------------------------------------
# Pure-JAX f32 reference (mirrors the torch forward) for a sanity check
# --------------------------------------------------------------------------
def reference_forward(p, linear_dense, linear_sparse_idx, dnn_dense, dnn_sparse_idx):
    P = jax.lax.Precision.HIGHEST
    lin_emb = jnp.stack(
        [p["lin_emb"][i][linear_sparse_idx[:, i]] for i in range(len(p["lin_emb"]))],
        axis=1)
    lin_sparse_logits = jnp.sum(lin_emb, axis=1)
    lin_dense_logits = jnp.dot(linear_dense, p["w_lin"], precision=P) + p["b_lin"]
    linear_logit = lin_dense_logits + lin_sparse_logits

    dnn_emb_list = [p["dnn_emb"][i][dnn_sparse_idx[:, i]] for i in range(len(p["dnn_emb"]))]
    cin_input = jnp.stack(dnn_emb_list, axis=1)
    dnn_sparse = jnp.concatenate(dnn_emb_list, axis=1)

    def ref_cin_layer(x0, xk, w):
        B, F0, D = x0.shape
        Fk = xk.shape[1]
        z = (x0[:, :, None, :] * xk[:, None, :, :]).reshape(B, F0 * Fk, D)
        return jnp.einsum("hm,bmd->bhd", w, z, precision=P)

    h = cin_input
    cin_outs = []
    for w in p["cin_W"]:
        h = ref_cin_layer(cin_input, h, w)
        cin_outs.append(h)
    cin_cat = jnp.concatenate(cin_outs, axis=1)
    exfm_out = jnp.sum(cin_cat, axis=2)
    exfm_logits = jnp.dot(exfm_out, p["w_cinlog"], precision=P) + p["b_cinlog"]

    def ln(x, eps=1e-5):
        mu = jnp.mean(x, axis=-1, keepdims=True)
        var = jnp.mean((x - mu) ** 2, axis=-1, keepdims=True)
        return (x - mu) * jax.lax.rsqrt(var + eps)

    x = jnp.concatenate([dnn_dense, dnn_sparse], axis=1)
    x = ln(jnp.maximum(jnp.dot(x, p["w1"], precision=P) + p["b1"], 0.0))
    x = ln(jnp.maximum(jnp.dot(x, p["w2"], precision=P) + p["b2"], 0.0))
    dnn_logit = jnp.maximum(jnp.dot(x, p["w3"], precision=P) + p["b3"], 0.0)

    return linear_logit + dnn_logit + exfm_logits


if __name__ == "__main__":
    B = 8
    dense_dim = 8
    sparse_dim = 8          # number of DNN sparse features (CIN field_nums[0])
    embed_dim = 8
    n_lin_sparse = 8
    lin_vocab = 20
    dnn_vocab = 20

    root = jax.random.PRNGKey(0)
    k_param, k_ld, k_ls, k_dd, k_ds = jax.random.split(root, 5)

    params = make_params(k_param, n_lin_sparse=n_lin_sparse, lin_vocab=lin_vocab,
                         dense_dim=dense_dim, sparse_dim=sparse_dim,
                         embed_dim=embed_dim, dnn_vocab=dnn_vocab)

    linear_dense = jax.random.normal(k_ld, (B, dense_dim), jnp.float32)
    linear_sparse_idx = jax.random.randint(k_ls, (B, n_lin_sparse), 0, lin_vocab, jnp.int32)
    dnn_dense = jax.random.normal(k_dd, (B, dense_dim), jnp.float32)
    dnn_sparse_idx = jax.random.randint(k_ds, (B, sparse_dim), 0, dnn_vocab, jnp.int32)

    out = xdeepfm_forward(params, linear_dense, linear_sparse_idx,
                          dnn_dense, dnn_sparse_idx)
    out = jax.block_until_ready(out)

    ref = reference_forward(params, linear_dense, linear_sparse_idx,
                            dnn_dense, dnn_sparse_idx)
    ref = jax.block_until_ready(ref)

    assert out.shape == (B, 1), out.shape
    assert bool(jnp.all(jnp.isfinite(out)))
    # bf16 MXU inputs (f32 accumulation) vs. the f32/HIGHEST reference: tolerance
    # relaxed from 5e-3 to 2e-2 to cover bf16 operand rounding.
    assert bool(jnp.allclose(out, ref, atol=2e-2, rtol=2e-2)), (out, ref)
    print("KERNEL_OK")
</pallas_src>

<mosaic_0001>
module attributes {stable_mosaic.version = 11 : i64} {
  func.func @_cin_fused_kernel(%arg0: i32, %arg1: memref<8x64xf32, #tpu.memory_space<vmem>>, %arg2: memref<1x256xf32, #tpu.memory_space<vmem>>, %arg3: memref<128x64xbf16, #tpu.memory_space<vmem>>, %arg4: memref<128x1024xbf16, #tpu.memory_space<vmem>>, %arg5: memref<1x8xf32, #tpu.memory_space<vmem>>) attributes {dimension_semantics = [#tpu.dimension_semantics<parallel>], iteration_bounds = array<i64: 1>, scalar_prefetch = 0 : i64, scratch_operands = 0 : i64, tpu.core_type = #tpu.core_type<tc>, window_params = [{transform_indices = @transform_0, window_bounds = array<i64: 8, 64>}, {pipeline_mode = #tpu.pipeline_mode<synchronous>, transform_indices = @transform_1, window_bounds = array<i64: 1, 256>}, {pipeline_mode = #tpu.pipeline_mode<synchronous>, transform_indices = @transform_2, window_bounds = array<i64: 128, 64>}, {pipeline_mode = #tpu.pipeline_mode<synchronous>, transform_indices = @transform_3, window_bounds = array<i64: 128, 1024>}, {transform_indices = @transform_4, window_bounds = array<i64: 1, 8>}]} {
    %c0 = arith.constant 0 : index
    %c0_0 = arith.constant 0 : index
    %0 = vector.load %arg1[%c0, %c0_0] : memref<8x64xf32, #tpu.memory_space<vmem>>, vector<8x64xf32>
    %1 = tpu.iota {dimensions = array<i32: 0>} : vector<64x8xi32>
    %2 = tpu.iota {dimensions = array<i32: 1>} : vector<64x8xi32>
    %c8_i32 = arith.constant 8 : i32
    %3 = vector.broadcast %c8_i32 : i32 to vector<64x8xi32>
    %4 = arith.muli %2, %3 : vector<64x8xi32>
    %5 = arith.cmpi sge, %1, %4 : vector<64x8xi32>
    %c8_i32_1 = arith.constant 8 : i32
    %6 = vector.broadcast %c8_i32_1 : i32 to vector<64x8xi32>
    %7 = arith.addi %4, %6 : vector<64x8xi32>
    %8 = arith.cmpi slt, %1, %7 : vector<64x8xi32>
    %9 = arith.andi %5, %8 : vector<64x8xi1>
    %cst = arith.constant 1.000000e+00 : f32
    %cst_2 = arith.constant 0.000000e+00 : f32
    %10 = vector.broadcast %cst : f32 to vector<64x8xf32>
    %11 = vector.broadcast %cst_2 : f32 to vector<64x8xf32>
    %12 = arith.select %9, %10, %11 : vector<64x8xi1>, vector<64x8xf32>
    %13 = arith.truncf %12 : vector<64x8xf32> to vector<64x8xbf16>
    %cst_3 = arith.constant 0.000000e+00 : f32
    %14 = vector.broadcast %cst_3 : f32 to vector<1x8xf32>
    %c0_4 = arith.constant 0 : index
    %c0_5 = arith.constant 0 : index
    %15 = vector.load %arg3[%c0_4, %c0_5] : memref<128x64xbf16, #tpu.memory_space<vmem>>, vector<128x64xbf16>
    %16 = vector.shape_cast %0 : vector<8x64xf32> to vector<8x1x64xf32>
    %17 = vector.shape_cast %0 : vector<8x64xf32> to vector<1x8x64xf32>
    %18 = vector.broadcast %16 : vector<8x1x64xf32> to vector<8x8x64xf32>
    %19 = vector.broadcast %17 : vector<1x8x64xf32> to vector<8x8x64xf32>
    %20 = arith.mulf %18, %19 : vector<8x8x64xf32>
    %21 = vector.shape_cast %20 : vector<8x8x64xf32> to vector<64x64xf32>
    %22 = arith.truncf %21 : vector<64x64xf32> to vector<64x64xbf16>
    %cst_6 = arith.constant dense<0.000000e+00> : vector<128x64xf32>
    %23 = tpu.matmul %15, %22, %cst_6 {dimension_numbers = #tpu.dot_dimension_numbers<[1], [0], [0], [1], [0, 0, 1, 1], [], []>} : vector<128x64xbf16>, vector<64x64xbf16>, vector<128x64xf32> -> vector<128x64xf32>
    %24 = arith.truncf %23 : vector<128x64xf32> to vector<128x64xbf16>
    %cst_7 = arith.constant dense<0.000000e+00> : vector<128x8xf32>
    %25 = tpu.matmul %24, %13, %cst_7 {dimension_numbers = #tpu.dot_dimension_numbers<[1], [0], [0], [1], [0, 0, 1, 1], [], []>} : vector<128x64xbf16>, vector<64x8xbf16>, vector<128x8xf32> -> vector<128x8xf32>
    %c0_8 = arith.constant 0 : index
    %c0_9 = arith.constant 0 : index
    %26 = vector.load %arg2[%c0_8, %c0_9] : memref<1x256xf32, #tpu.memory_space<vmem>>, vector<1x128xf32>
    %cst_10 = arith.constant dense<0.000000e+00> : vector<1x8xf32>
    %27 = tpu.matmul %26, %25, %cst_10 {dimension_numbers = #tpu.dot_dimension_numbers<[1], [0], [0], [1], [0, 0, 1, 1], [], []>} : vector<1x128xf32>, vector<128x8xf32>, vector<1x8xf32> -> vector<1x8xf32>
    %28 = arith.addf %14, %27 : vector<1x8xf32>
    %c0_11 = arith.constant 0 : index
    %c0_12 = arith.constant 0 : index
    %29 = vector.load %arg4[%c0_11, %c0_12] : memref<128x1024xbf16, #tpu.memory_space<vmem>>, vector<128x1024xbf16>
    %30 = vector.shape_cast %0 : vector<8x64xf32> to vector<8x1x64xf32>
    %31 = vector.shape_cast %23 : vector<128x64xf32> to vector<1x128x64xf32>
    %32 = vector.broadcast %30 : vector<8x1x64xf32> to vector<8x128x64xf32>
    %33 = vector.broadcast %31 : vector<1x128x64xf32> to vector<8x128x64xf32>
    %34 = arith.mulf %32, %33 : vector<8x128x64xf32>
    %35 = vector.shape_cast %34 : vector<8x128x64xf32> to vector<1024x64xf32>
    %36 = arith.truncf %35 : vector<1024x64xf32> to vector<1024x64xbf16>
    %cst_13 = arith.constant dense<0.000000e+00> : vector<128x64xf32>
    %37 = tpu.matmul %29, %36, %cst_13 {dimension_numbers = #tpu.dot_dimension_numbers<[1], [0], [0], [1], [0, 0, 1, 1], [], []>} : vector<128x1024xbf16>, vector<1024x64xbf16>, vector<128x64xf32> -> vector<128x64xf32>
    %38 = arith.truncf %37 : vector<128x64xf32> to vector<128x64xbf16>
    %cst_14 = arith.constant dense<0.000000e+00> : vector<128x8xf32>
    %39 = tpu.matmul %38, %13, %cst_14 {dimension_numbers = #tpu.dot_dimension_numbers<[1], [0], [0], [1], [0, 0, 1, 1], [], []>} : vector<128x64xbf16>, vector<64x8xbf16>, vector<128x8xf32> -> vector<128x8xf32>
    %c0_15 = arith.constant 0 : index
    %c128 = arith.constant 128 : index
    %40 = vector.load %arg2[%c0_15, %c128] : memref<1x256xf32, #tpu.memory_space<vmem>>, vector<1x128xf32>
    %cst_16 = arith.constant dense<0.000000e+00> : vector<1x8xf32>
    %41 = tpu.matmul %40, %39, %cst_16 {dimension_numbers = #tpu.dot_dimension_numbers<[1], [0], [0], [1], [0, 0, 1, 1], [], []>} : vector<1x128xf32>, vector<128x8xf32>, vector<1x8xf32> -> vector<1x8xf32>
    %42 = arith.addf %28, %41 : vector<1x8xf32>
    %c0_17 = arith.constant 0 : index
    %c0_18 = arith.constant 0 : index
    %43 = vector.load %arg5[%c0_17, %c0_18] : memref<1x8xf32, #tpu.memory_space<vmem>>, vector<1x8xf32>
    tpu.vector_store %arg5[%c0_17, %c0_18], %42 {strides = array<i32>} : memref<1x8xf32, #tpu.memory_space<vmem>>, vector<1x8xf32>,
    return
  }
  func.func @transform_0(%arg0: i32) -> (i32, i32) {
    %c0_i32 = arith.constant 0 : i32
    %c0_i32_0 = arith.constant 0 : i32
    return %c0_i32, %arg0 : i32, i32
  }
  func.func @transform_1(%arg0: i32) -> (i32, i32) {
    %c0_i32 = arith.constant 0 : i32
    %c0_i32_0 = arith.constant 0 : i32
    %c0_i32_1 = arith.constant 0 : i32
    return %c0_i32, %c0_i32_0 : i32, i32
  }
  func.func @transform_2(%arg0: i32) -> (i32, i32) {
    %c0_i32 = arith.constant 0 : i32
    %c0_i32_0 = arith.constant 0 : i32
    %c0_i32_1 = arith.constant 0 : i32
    return %c0_i32, %c0_i32_0 : i32, i32
  }
  func.func @transform_3(%arg0: i32) -> (i32, i32) {
    %c0_i32 = arith.constant 0 : i32
    %c0_i32_0 = arith.constant 0 : i32
    %c0_i32_1 = arith.constant 0 : i32
    return %c0_i32, %c0_i32_0 : i32, i32
  }
  func.func @transform_4(%arg0: i32) -> (i32, i32) {
    %c0_i32 = arith.constant 0 : i32
    %c0_i32_0 = arith.constant 0 : i32
    return %c0_i32, %arg0 : i32, i32
  }
}

</mosaic_0001>

<bundles_post_ra>
// kernel: tpu_custom_call.1
= control target key start
LH: loop header
LB: loop body
LE: loop exit
PB: predicated region body
PF: predicated region fallthrough
CT: control target
= control target key end

     0   :  { %9 = vsyncpa [#allocation3], 0  ;;  %s3274_s0 = inlined_call_operand.vmem [shape: f32[8,64], index: 0, kind: input, shape index: {}]   ;;  %s3275_s1 = inlined_call_operand.vmem [shape: f32[1,256], index: 1, kind: input, shape index: {}]   ;;  %s3276_s2 = inlined_call_operand.vmem [shape: bf16[128,64], index: 2, kind: input, shape index: {}]   ;;  %s3277_s3 = inlined_call_operand.hbm [shape: bf16[128,1024], index: 3, kind: input, shape index: {}]   ;;  %s3278_s4 = inlined_call_operand.hbm [shape: f32[1,8], index: 4, kind: output, shape index: {}]  }
   0x1   :  { %10 = vsyncpa [#allocation4], 0  ;;  %s2440_s15 = smov [#allocation2]   ;;  %s2392_s19 = scalar_lea.hbm %s3277_s3, 8192 }
   0x2   :  { %s22_s16 = sshll.u32 %s2440_s15, 4  ;;  %p2393_p0 = scmp.ne.s32.totalorder %s3277_s3, %s2392_s19  ;;  %s23_s16 = int_to_ptr.vmem [resolvable:$true] %s22_s16 }
   0x3   :  { %p2396_p1 = scmp.lt.u32.totalorder %s2392_s19, %s3277_s3 }
   0x5   :  { %p2398_p2 = pnand %p2396_p1, %p2393_p0 }
   0x7   :  { %2401 = shalt.err (!%p2398_p2)
}
   0x8   :  { %s2402_s24 = scalar_lea.vmem %s23_s16, 8192  ;;  %p2407_p4 = scmp.lt.s32.totalorder %s23_s16, %s23_s16 }
   0x9   :  { %p2403_p3 = scmp.ne.s32.totalorder %s23_s16, %s2402_s24  ;;  %p2408_p5 = scmp.lt.s32.totalorder %s2402_s24, %s2402_s24 }
   0xb   :  { %p2409_p6 = por %p2408_p5, %p2407_p4 }
   0xd   :  { %p2410_p7 = pnand %p2409_p6, %p2403_p3 }
   0xf   :  { %2413 = shalt.err (!%p2410_p7)
}
  0x10   :  { %s2441_s25 = smov 512   ;;  %s2442_s26 = smov 32  }
  0x11   :  { %28 = dma.hbm_to_vmem [thread:$0]  %s3277_s3, 8192, %s23_s16, [#allocation3], %s2441_s25, %s2441_s25, %s2442_s26  }
  0x12   :  { %2436 = dma.done.wait [#allocation3], 8192  }
  0x13   :  { %2437 = vsyncadd [#allocation3], 4294959104  ;;  %v34_v0 = vlaneseq  ;;  %v2443_v1 = vmov 1966171168   ;;  %vm241_vm0 = vcmask 523264   ;;  %v2495_v9 = vld [vmem:[%s3274_s0] sm:$0xff] }
  0x14   :  { %v102_v2 = vunpack.c.l.s4 %v2443_v1  ;;  %v100_v11 = vcombine.high %v2495_v9, %v2495_v9  ;;  %v2384_v14 = vld [vmem:[%s3276_s2] sm:$0xff]   ;;  %v3295_v39 = vmov 0  ;;  %v3279_v42 = vmov 1.0|1.0   ;;  %v2385_v54 = vld [vmem:[%s3276_s2 + $0x8] sm:$0xff]   ;;  %v2386_v55 = vld [vmem:[%s3276_s2 + $0x10] sm:$0xff]  }
  0x15   :  { %v2486_v3 = vshrl.u32 %v34_v0, 7  ;;  %v44_v4 = vand.u32 127, %v34_v0  ;;  %2190 = vmatprep.mubr.msk.bf16.mxu0 %vm241_vm0, %v2384_v14  ;;  %v3298_v48 = vmov 0  ;;  %v3301_v52 = vmov 0  ;;  %v2387_v56 = vld [vmem:[%s3276_s2 + $0x18] sm:$0xff]   ;;  %v2388_v57 = vld [vmem:[%s3276_s2 + $0x20] sm:$0xff]  }
  0x16   :  { %v103_v5 = vunpack.c.0.s8 %v102_v2  ;;  %v2389_v58 = vld [vmem:[%s3276_s2 + $0x28] sm:$0xff]   ;;  %v2390_v59 = vld [vmem:[%s3276_s2 + $0x30] sm:$0xff]   ;;  %v2391_v60 = vld [vmem:[%s3276_s2 + $0x38] sm:$0xff]   ;;  %v3304_v63 = vmov 0  ;;  %s2448_s22 = smov [#allocation5]  }
  0x17   :  { %v2488_v6 = vmul.u32 8, %v44_v4  ;;  %v36_v8 = vadd.s32 8, %v2486_v3  ;;  %v151_v13 = vsub.s32 0, %v2486_v3  ;;  %v37_v15 = vadd.s32 16, %v2486_v3  ;;  %v2654_v0 = vld [vmem:[#allocation2] sm:$0xff]  ;;  %v2662_v4 = vld [vmem:[#allocation2 + $0x8] sm:$0xff] }
  0x18   :  { %v106_v7 = vsub.s32 %v103_v5, %v2486_v3  ;;  %v38_v16 = vadd.s32 24, %v2486_v3  ;;  %v39_v20 = vadd.s32 32, %v2486_v3  ;;  %v40_v21 = vadd.s32 40, %v2486_v3  ;;  %v2656_v1 = vld [vmem:[#allocation2 + $0x20] sm:$0xff]  ;;  %v2664_v5 = vld [vmem:[#allocation2 + $0x28] sm:$0xff]  ;;  %s1735_s23 = sshll.u32 %s2448_s22, 4  ;;  %s1736_s23 = int_to_ptr.vmem [resolvable:$true] %s1735_s23 }
  0x19   :  { %v2498_v10 = vadd.s32 8, %v2488_v6  ;;  %vm46_vm1 = vcmp.ge.s32.totalorder %v2486_v3, %v2488_v6  ;;  %vm47_vm2 = vcmp.ge.s32.totalorder %v36_v8, %v2488_v6  ;;  %vm48_vm5 = vcmp.ge.s32.totalorder %v37_v15, %v2488_v6  ;;  %v2682_v14 = vld [vmem:[#allocation2 + $0xc0] sm:$0xff]  ;;  %s2414_s24 = scalar_lea.vmem %s1736_s23, 16  ;;  %s2418_s25 = scalar_lea.vmem %s1736_s23, 32 }
  0x1a   :  { %v107_v12 = vrot.slane %v2495_v9, %v106_v7  ;;  %v114_v17 = vrot.slane %v100_v11, %v106_v7  ;;  %vm49_vm6 = vcmp.ge.s32.totalorder %v38_v16, %v2488_v6  ;;  %vm50_vm12 = vcmp.ge.s32.totalorder %v39_v20, %v2488_v6  ;;  %v2676_v11 = vld [vmem:[#allocation2 + $0xa0] sm:$0xff]  ;;  %p2415_p8 = scmp.ne.s32.totalorder %s1736_s23, %s2414_s24  ;;  %p2419_p9 = scmp.lt.s32.totalorder %s1736_s23, %s1736_s23 }
  0x1b   :  { %vm55_vm3 = vcmp.lt.s32.totalorder %v2486_v3, %v2498_v10  ;;  %vm56_vm4 = vcmp.lt.s32.totalorder %v36_v8, %v2498_v10  ;;  %vm57_vm8 = vcmp.lt.s32.totalorder %v37_v15, %v2498_v10  ;;  %vm58_vm10 = vcmp.lt.s32.totalorder %v38_v16, %v2498_v10  ;;  %v2670_v8 = vld [vmem:[#allocation2 + $0x48] sm:$0xff]  ;;  %v2684_v15 = vld [vmem:[#allocation2 + $0xe0] sm:$0xff]  ;;  %p2420_p10 = scmp.lt.s32.totalorder %s2418_s25, %s2414_s24 }
  0x1c   :  { %v115_v18 = vcombine.high %v107_v12, %v107_v12  ;;  %v123_v19 = vrot.slane %v107_v12, %v106_v7  ;;  %v116_v22 = vcombine.high %v114_v17, %v114_v17  ;;  %v130_v23 = vrot.slane %v114_v17, %v106_v7  ;;  %vm63_vm7 = vmand %vm46_vm1, %vm55_vm3  ;;  %v2678_v12 = vld [vmem:[#allocation2 + $0x88] sm:$0xff]  ;;  %3307 = vst [vmem:[#allocation12_spill] sm:$0xff] %v2684_v15 }
  0x1d   :  { %vm64_vm9 = vmand %vm47_vm2, %vm56_vm4  ;;  %vm51_vm13 = vcmp.ge.s32.totalorder %v40_v21, %v2488_v6  ;;  %vm59_vm15 = vcmp.lt.s32.totalorder %v39_v20, %v2498_v10  ;;  %vm60_vm1 = vcmp.lt.s32.totalorder %v40_v21, %v2498_v10  ;;  %v41_v61 = vadd.s32 48, %v2486_v3  ;;  %v2686_v16 = vld [vmem:[#allocation2 + $0xc8] sm:$0xff]  ;;  %p2421_p11 = por %p2420_p10, %p2419_p9 }
  0x1e   :  { %v137_v24 = vrot.slane %v115_v18, %v106_v7  ;;  %v145_v25 = vcombine.high %v123_v19, %v123_v19  ;;  %v2517_v26 = vrot.slane %v123_v19, %v151_v13  ;;  %v144_v27 = vrot.slane %v116_v22, %v106_v7  ;;  %vm2550_vm11 = vmpackc.low %vm64_vm9, %vm63_vm7  ;;  %v2668_v7 = vld [vmem:[#allocation2 + $0x60] sm:$0xff]  ;;  %3308 = vst [vmem:[#allocation13_spill] sm:$0xff] %v2686_v16  ;;  %v2688_v17 = vld [vmem:[#allocation2 + $0xe8] sm:$0xff] }
  0x1f   :  { %v146_v28 = vcombine.high %v130_v23, %v130_v23  ;;  %v2526_v32 = vrot.slane %v130_v23, %v151_v13  ;;  %v3296_v39 = vsel %vm2550_vm11, 4294967295, %v3295_v39  ;;  %2206 = vmatprep.subr.msk.bf16.mxu1 %vm2550_vm11, %v3279_v42  ;;  %vm65_vm14 = vmand %vm48_vm5, %vm57_vm8  ;;  %v42_v62 = vadd.s32 56, %v2486_v3  ;;  %3309 = vst [vmem:[#allocation14_spill] sm:$0xff] %v2688_v17  ;;  %p2422_p12 = pnand %p2421_p11, %p2415_p8 }
  0x20   :  { %v147_v29 = vcombine.high %v137_v24, %v137_v24  ;;  %v2522_v30 = vrot.slane %v137_v24, %v151_v13  ;;  %v2524_v31 = vrot.slane %v145_v25, %v151_v13  ;;  %v189_v33 = vmul.f32 %v2517_v26, %v2495_v9  ;;  %3297 = vst [vmem:[#allocation8_spill] sm:$0xff] %v3296_v39  ;;  %vm66_vm2 = vmand %vm49_vm6, %vm58_vm10 }
  0x21   :  { %v148_v34 = vcombine.high %v144_v27, %v144_v27  ;;  %v2539_v36 = vrot.slane %v144_v27, %v151_v13  ;;  %v2556_v40 = vrot.slane %v146_v28, %v151_v13  ;;  %v193_v45 = vmul.f32 %v2526_v32, %v2495_v9  ;;  %2207 = vmatpush3.bf16.msk.msra.mxu1 %vm2550_vm11, %v3279_v42  ;;  %vm2582_vm3 = vmpackc.low %vm66_vm2, %vm65_vm14 }
  0x22   :  { %v2537_v35 = vrot.slane %v147_v29, %v151_v13  ;;  %v190_v37 = vmul.f32 %v2522_v30, %v2495_v9  ;;  %v191_v38 = vmul.f32 %v2524_v31, %v2495_v9  ;;  %v3299_v48 = vsel %vm2582_vm3, 4294967295, %v3298_v48  ;;  %2208 = vmatprep.subr.msk.bf16.mxu1 %vm2582_vm3, %v3279_v42  ;;  %vm67_vm4 = vmand %vm50_vm12, %vm59_vm15 }
  0x23   :  { %v2569_v43 = vrot.slane %v148_v34, %v151_v13  ;;  %v194_v46 = vmul.f32 %v2539_v36, %v2495_v9  ;;  %3300 = vst [vmem:[#allocation9_spill] sm:$0xff] %v3299_v48  ;;  %vm68_vm5 = vmand %vm51_vm13, %vm60_vm1  ;;  %v195_v50 = vmul.f32 %v2556_v40, %v2495_v9  ;;  %vm52_vm7 = vcmp.ge.s32.totalorder %v41_v61, %v2488_v6  ;;  %v2680_v13 = vld [vmem:[#allocation2 + $0xa8] sm:$0xff] }
  0x24   :  { %v192_v41 = vmul.f32 %v2537_v35, %v2495_v9  ;;  %v197_v44 = vpack.c.bf16 %v190_v37, %v189_v33  ;;  %vm2600_vm6 = vmpackc.low %vm68_vm5, %vm67_vm4  ;;  %vm53_vm8 = vcmp.ge.s32.totalorder %v42_v62, %v2488_v6  ;;  %vm61_vm9 = vcmp.lt.s32.totalorder %v41_v61, %v2498_v10  ;;  %v2666_v6 = vld [vmem:[#allocation2 + $0x40] sm:$0xff] }
  0x25   :  { %v199_v49 = vpack.c.bf16 %v194_v46, %v193_v45  ;;  %v196_v51 = vmul.f32 %v2569_v43, %v2495_v9  ;;  %2209 = vmatpush3.bf16.msk.msra.mxu1 %vm2582_vm3, %v3279_v42  ;;  %v3302_v52 = vsel %vm2600_vm6, 4294967295, %v3301_v52  ;;  %vm62_vm10 = vcmp.lt.s32.totalorder %v42_v62, %v2498_v10  ;;  %vm69_vm12 = vmand %vm52_vm7, %vm61_vm9  ;;  %v2672_v9 = vld [vmem:[#allocation2 + $0x68] sm:$0xff]  ;;  %v2674_v10 = vld [vmem:[#allocation2 + $0x80] sm:$0xff] }
  0x26   :  { %v198_v47 = vpack.c.bf16 %v192_v41, %v191_v38  ;;  %2182 = vmatprep.subr.bf16.mxu0 %v197_v44  ;;  %3303 = vst [vmem:[#allocation10_spill] sm:$0xff] %v3302_v52  ;;  %2210 = vmatprep.subr.msk.bf16.mxu1 %vm2600_vm6, %v3279_v42  ;;  %vm70_vm13 = vmand %vm53_vm8, %vm62_vm10  ;;  %v1777_v3 = vcombine.high %v2654_v0, %v2656_v1 }
  0x27   :  { %2183 = vmatpush3.bf16.msra.mxu0 %v197_v44  ;;  %v200_v53 = vpack.c.bf16 %v196_v51, %v195_v50  ;;  %vm2644_vm14 = vmpackc.low %vm70_vm13, %vm69_vm12 }
  0x28   :  { %2184 = vmatprep.subr.bf16.mxu0 %v198_v47  ;;  %v3305_v63 = vsel %vm2644_vm14, 4294967295, %v3304_v63 }
  0x29   :  { %2211 = vmatpush3.bf16.msk.msra.mxu1 %vm2600_vm6, %v3279_v42  ;;  %3306 = vst [vmem:[#allocation11_spill] sm:$0xff] %v3305_v63 }
  0x2a   :  { %2212 = vmatprep.subr.msk.bf16.mxu1 %vm2644_vm14, %v3279_v42 }
  0x2b   :  { %2185 = vmatpush3.bf16.msra.mxu0 %v198_v47 }
  0x2c   :  { %2186 = vmatprep.subr.bf16.mxu0 %v199_v49 }
  0x2d   :  { %2213 = vmatpush3.bf16.msk.msra.mxu1 %vm2644_vm14, %v3279_v42 }
  0x2f   :  { %2187 = vmatpush3.bf16.msra.mxu0 %v199_v49 }
  0x30   :  { %2188 = vmatprep.subr.bf16.mxu0 %v200_v53 }
  0x33   :  { %2189 = vmatpush3.bf16.msra.mxu0 %v200_v53 }
  0x36   :  { %2191 = vmatmul.mubr.msk.bf16.vlgmr.msra.gmra.mrb[0].mxu0 %vm241_vm0, %v2385_v54 }
  0x37   :  { %2194 = vmatprep.mubr.msk.bf16.mxu0 %vm241_vm0, %v2386_v55 }
  0x3e   :  { %2195 = vmatmul.mubr.msk.bf16.gmra.mrb[4].mxu0 %vm241_vm0, %v2387_v56 }
  0x3f   :  { %2198 = vmatprep.mubr.msk.bf16.mxu0 %vm241_vm0, %v2388_v57 }
  0x46   :  { %2199 = vmatmul.mubr.msk.bf16.gmra.mrb[8].mxu0 %vm241_vm0, %v2389_v58 }
  0x47   :  { %2202 = vmatprep.mubr.msk.bf16.mxu0 %vm241_vm0, %v2390_v59 }
  0x4e   :  { %2203 = vmatmul.mubr.msk.bf16.gmra.mrb[12].mxu0 %vm241_vm0, %v2391_v60 }
  0x4f   :  { %1101 = vmatprep.mubr.bf16.mxu0 %v1777_v3 }
 0x109   :  { %v2706_v27 = vpop.f32.mrb[0].mxu0 }
 0x10a   :  { %v2716_v37 = vpop.f32.mrb[1].mxu0  ;;  %v575_v38 = vmul.f32 %v2706_v27, %v2522_v30  ;;  %v607_v41 = vmul.f32 %v2706_v27, %v2537_v35  ;;  %v559_v44 = vmul.f32 %v2706_v27, %v2517_v26  ;;  %v591_v45 = vmul.f32 %v2706_v27, %v2524_v31 }
 0x10b   :  { %v2726_v46 = vpop.f32.mrb[2].mxu0  ;;  %v573_v47 = vmul.f32 %v2716_v37, %v2522_v30  ;;  %v605_v49 = vmul.f32 %v2716_v37, %v2537_v35  ;;  %v557_v50 = vmul.f32 %v2716_v37, %v2517_v26  ;;  %v589_v51 = vmul.f32 %v2716_v37, %v2524_v31 }
 0x10c   :  { %v2736_v53 = vpop.f32.mrb[3].mxu0  ;;  %v364_v54 = vpack.c.bf16 %v2726_v46, %v2706_v27  ;;  %v576_v55 = vmul.f32 %v2726_v46, %v2522_v30  ;;  %v608_v56 = vmul.f32 %v2726_v46, %v2537_v35  ;;  %v560_v57 = vmul.f32 %v2726_v46, %v2517_v26 }
 0x10d   :  { %v363_v58 = vpack.c.bf16 %v2736_v53, %v2716_v37  ;;  %v574_v59 = vmul.f32 %v2736_v53, %v2522_v30  ;;  %v606_v60 = vmul.f32 %v2736_v53, %v2537_v35  ;;  %v558_v61 = vmul.f32 %v2736_v53, %v2517_v26 }
 0x10e   :  { %v590_v62 = vmul.f32 %v2736_v53, %v2524_v31  ;;  %v694_v3 = vpack.c.bf16 %v576_v55, %v575_v38  ;;  %v710_v42 = vpack.c.bf16 %v608_v56, %v607_v41  ;;  %v686_v34 = vpack.c.bf16 %v560_v57, %v559_v44 }
 0x10f   :  { %2214 = vmatprep.mubr.msk.bf16.mxu1 %vm241_vm0, %v363_v58  ;;  %v693_v33 = vpack.c.bf16 %v574_v59, %v573_v47  ;;  %v709_v29 = vpack.c.bf16 %v606_v60, %v605_v49  ;;  %v685_v25 = vpack.c.bf16 %v558_v61, %v557_v50  ;;  %v592_v28 = vmul.f32 %v2726_v46, %v2524_v31 }
 0x110   :  { %2215 = vmatmul.mubr.msk.bf16.vlgmr.msra.gmra.mrb[0].mxu1 %vm241_vm0, %v364_v54  ;;  %v701_v24 = vpack.c.bf16 %v590_v62, %v589_v51  ;;  %v2762_v23 = vmul.f32 %v2716_v37, %v2539_v36  ;;  %v2766_v38 = vmul.f32 %v2736_v53, %v2539_v36  ;;  %v2770_v41 = vmul.f32 %v2716_v37, %v2569_v43 }
 0x111   :  { %v2772_v44 = vpop.f32.mrb[4].mxu0  ;;  %1880 = vmatprep.subr.bf16.mxu0 %v693_v33  ;;  %1944 = vmatprep.subr.bf16.mxu1 %v709_v29  ;;  %v702_v47 = vpack.c.bf16 %v592_v28, %v591_v45  ;;  %v2776_v49 = vmul.f32 %v2736_v53, %v2569_v43  ;;  %v2780_v50 = vmul.f32 %v2716_v37, %v2526_v32 }
 0x112   :  { %v2782_v51 = vpop.f32.mrb[5].mxu0  ;;  %1881 = vmatpush3.bf16.msra.mxu0 %v685_v25  ;;  %1945 = vmatpush3.bf16.msra.mxu1 %v701_v24  ;;  %v579_v54 = vmul.f32 %v2772_v44, %v2522_v30  ;;  %v611_v33 = vmul.f32 %v2772_v44, %v2537_v35  ;;  %v563_v28 = vmul.f32 %v2772_v44, %v2517_v26 }
 0x113   :  { %v2790_v29 = vpop.f32.mrb[6].mxu0  ;;  %1882 = vmatprep.subr.bf16.mxu0 %v694_v3  ;;  %1946 = vmatprep.subr.bf16.mxu1 %v710_v42  ;;  %v577_v45 = vmul.f32 %v2782_v51, %v2522_v30  ;;  %v609_v25 = vmul.f32 %v2782_v51, %v2537_v35  ;;  %v561_v24 = vmul.f32 %v2782_v51, %v2517_v26 }
 0x114   :  { %v2798_v55 = vpop.f32.mrb[7].mxu0  ;;  %v366_v56 = vpack.c.bf16 %v2790_v29, %v2772_v44  ;;  %v593_v57 = vmul.f32 %v2782_v51, %v2524_v31  ;;  %v580_v42 = vmul.f32 %v2790_v29, %v2522_v30  ;;  %v612_v58 = vmul.f32 %v2790_v29, %v2537_v35 }
 0x115   :  { %v365_v59 = vpack.c.bf16 %v2798_v55, %v2782_v51  ;;  %v578_v60 = vmul.f32 %v2798_v55, %v2522_v30  ;;  %v610_v61 = vmul.f32 %v2798_v55, %v2537_v35  ;;  %v562_v62 = vmul.f32 %v2798_v55, %v2517_v26 }
 0x116   :  { %1883 = vmatpush3.bf16.msra.mxu0 %v686_v34  ;;  %1947 = vmatpush3.bf16.msra.mxu1 %v702_v47  ;;  %v594_v3 = vmul.f32 %v2798_v55, %v2524_v31  ;;  %v696_v21 = vpack.c.bf16 %v580_v42, %v579_v54  ;;  %v712_v22 = vpack.c.bf16 %v612_v58, %v611_v33 }
 0x117   :  { %2218 = vmatprep.mubr.msk.bf16.mxu1 %vm241_vm0, %v365_v59  ;;  %v695_v20 = vpack.c.bf16 %v578_v60, %v577_v45  ;;  %v711_v18 = vpack.c.bf16 %v610_v61, %v609_v25  ;;  %v687_v2 = vpack.c.bf16 %v562_v62, %v561_v24  ;;  %v564_v19 = vmul.f32 %v2790_v29, %v2517_v26 }
 0x118   :  { %2219 = vmatmul.mubr.msk.bf16.gmra.mrb[4].mxu1 %vm241_vm0, %v366_v56  ;;  %v703_v63 = vpack.c.bf16 %v594_v3, %v593_v57  ;;  %v595_v34 = vmul.f32 %v2772_v44, %v2524_v31  ;;  %v596_v47 = vmul.f32 %v2790_v29, %v2524_v31  ;;  %v2834_v24 = vmul.f32 %v2736_v53, %v2526_v32 }
 0x119   :  { %v2828_v33 = vpop.f32.mrb[8].mxu0  ;;  %1884 = vmatprep.subr.bf16.mxu0 %v695_v20  ;;  %1948 = vmatprep.subr.bf16.mxu1 %v711_v18  ;;  %v688_v45 = vpack.c.bf16 %v564_v19, %v563_v28 }
 0x11a   :  { %v2836_v56 = vpop.f32.mrb[9].mxu0  ;;  %1885 = vmatpush3.bf16.msra.mxu0 %v687_v2  ;;  %1949 = vmatpush3.bf16.msra.mxu1 %v703_v63  ;;  %v704_v57 = vpack.c.bf16 %v596_v47, %v595_v34  ;;  %v583_v42 = vmul.f32 %v2828_v33, %v2522_v30  ;;  %v615_v20 = vmul.f32 %v2828_v33, %v2537_v35 }
 0x11b   :  { %v2842_v18 = vpop.f32.mrb[10].mxu0  ;;  %1886 = vmatprep.subr.bf16.mxu0 %v696_v21  ;;  %1950 = vmatprep.subr.bf16.mxu1 %v712_v22  ;;  %v581_v19 = vmul.f32 %v2836_v56, %v2522_v30  ;;  %v613_v28 = vmul.f32 %v2836_v56, %v2537_v35  ;;  %v565_v63 = vmul.f32 %v2836_v56, %v2517_v26 }
 0x11c   :  { %v2850_v2 = vpop.f32.mrb[11].mxu0  ;;  %v368_v58 = vpack.c.bf16 %v2842_v18, %v2828_v33  ;;  %v597_v59 = vmul.f32 %v2836_v56, %v2524_v31  ;;  %v584_v21 = vmul.f32 %v2842_v18, %v2522_v30  ;;  %v616_v22 = vmul.f32 %v2842_v18, %v2537_v35 }
 0x11d   :  { %v367_v60 = vpack.c.bf16 %v2850_v2, %v2836_v56  ;;  %v582_v61 = vmul.f32 %v2850_v2, %v2522_v30  ;;  %v614_v62 = vmul.f32 %v2850_v2, %v2537_v35  ;;  %v566_v3 = vmul.f32 %v2850_v2, %v2517_v26 }
 0x11e   :  { %1887 = vmatpush3.bf16.msra.mxu0 %v688_v45  ;;  %1951 = vmatpush3.bf16.msra.mxu1 %v704_v57  ;;  %v598_v34 = vmul.f32 %v2850_v2, %v2524_v31  ;;  %v698_v47 = vpack.c.bf16 %v584_v21, %v583_v42  ;;  %v714_v25 = vpack.c.bf16 %v616_v22, %v615_v20 }
 0x11f   :  { %2222 = vmatprep.mubr.msk.bf16.mxu1 %vm241_vm0, %v367_v60  ;;  %v697_v54 = vpack.c.bf16 %v582_v61, %v581_v19  ;;  %v713_v52 = vpack.c.bf16 %v614_v62, %v613_v28  ;;  %v689_v48 = vpack.c.bf16 %v566_v3, %v565_v63  ;;  %v567_v39 = vmul.f32 %v2828_v33, %v2517_v26 }
 0x120   :  { %2223 = vmatmul.mubr.msk.bf16.gmra.mrb[8].mxu1 %vm241_vm0, %v368_v58  ;;  %v705_v17 = vpack.c.bf16 %v598_v34, %v597_v59  ;;  %v568_v45 = vmul.f32 %v2842_v18, %v2517_v26  ;;  %v599_v57 = vmul.f32 %v2828_v33, %v2524_v31  ;;  %v600_v42 = vmul.f32 %v2842_v18, %v2524_v31 }
 0x121   :  { %v2880_v20 = vpop.f32.mrb[12].mxu0  ;;  %1888 = vmatprep.subr.bf16.mxu0 %v697_v54  ;;  %1952 = vmatprep.subr.bf16.mxu1 %v713_v52  ;;  %v2886_v28 = vmul.f32 %v2716_v37, %v2556_v40  ;;  %v2890_v63 = vmul.f32 %v2736_v53, %v2556_v40 }
 0x122   :  { %v2892_v58 = vpop.f32.mrb[13].mxu0  ;;  %1889 = vmatpush3.bf16.msra.mxu0 %v689_v48  ;;  %1953 = vmatpush3.bf16.msra.mxu1 %v705_v17  ;;  %v690_v59 = vpack.c.bf16 %v568_v45, %v567_v39  ;;  %v706_v21 = vpack.c.bf16 %v600_v42, %v599_v57  ;;  %v587_v52 = vmul.f32 %v2880_v20, %v2522_v30 }
 0x123   :  { %v2896_v54 = vpop.f32.mrb[14].mxu0  ;;  %1890 = vmatprep.subr.bf16.mxu0 %v698_v47  ;;  %1954 = vmatprep.subr.bf16.mxu1 %v714_v25  ;;  %v585_v37 = vmul.f32 %v2892_v58, %v2522_v30  ;;  %v617_v53 = vmul.f32 %v2892_v58, %v2537_v35  ;;  %v569_v22 = vmul.f32 %v2892_v58, %v2517_v26 }
 0x124   :  { %v2904_v48 = vpop.f32.mrb[15].mxu0  ;;  %v370_v39 = vpack.c.bf16 %v2896_v54, %v2880_v20  ;;  %v601_v17 = vmul.f32 %v2892_v58, %v2524_v31  ;;  %v588_v25 = vmul.f32 %v2896_v54, %v2522_v30  ;;  %v619_v60 = vmul.f32 %v2880_v20, %v2537_v35 }
 0x125   :  { %v369_v61 = vpack.c.bf16 %v2904_v48, %v2892_v58  ;;  %v586_v62 = vmul.f32 %v2904_v48, %v2522_v30  ;;  %v618_v3 = vmul.f32 %v2904_v48, %v2537_v35  ;;  %v570_v34 = vmul.f32 %v2904_v48, %v2517_v26 }
 0x126   :  { %1891 = vmatpush3.bf16.msra.mxu0 %v690_v59  ;;  %1955 = vmatpush3.bf16.msra.mxu1 %v706_v21  ;;  %v602_v47 = vmul.f32 %v2904_v48, %v2524_v31  ;;  %v700_v45 = vpack.c.bf16 %v588_v25, %v587_v52  ;;  %v620_v57 = vmul.f32 %v2896_v54, %v2537_v35 }
 0x127   :  { %2226 = vmatprep.mubr.msk.bf16.mxu1 %vm241_vm0, %v369_v61  ;;  %v699_v42 = vpack.c.bf16 %v586_v62, %v585_v37  ;;  %v715_v19 = vpack.c.bf16 %v618_v3, %v617_v53  ;;  %v691_v30 = vpack.c.bf16 %v570_v34, %v569_v22  ;;  %v571_v16 = vmul.f32 %v2880_v20, %v2517_v26 }
 0x128   :  { %2227 = vmatmul.mubr.msk.bf16.gmra.mrb[12].mxu1 %vm241_vm0, %v370_v39  ;;  %v707_v15 = vpack.c.bf16 %v602_v47, %v601_v17  ;;  %v716_v59 = vpack.c.bf16 %v620_v57, %v619_v60  ;;  %v572_v21 = vmul.f32 %v2896_v54, %v2517_v26  ;;  %v603_v52 = vmul.f32 %v2880_v20, %v2524_v31 }
 0x129   :  { %1892 = vmatprep.subr.bf16.mxu0 %v699_v42  ;;  %1956 = vmatprep.subr.bf16.mxu1 %v715_v19  ;;  %v604_v35 = vmul.f32 %v2896_v54, %v2524_v31  ;;  %v733_v37 = vpack.c.bf16 %v2890_v63, %v2886_v28  ;;  %v639_v53 = vmul.f32 %v2706_v27, %v2539_v36 }
 0x12a   :  { %1893 = vmatpush3.bf16.msra.mxu0 %v691_v30  ;;  %1957 = vmatpush3.bf16.msra.mxu1 %v707_v15  ;;  %v692_v22 = vpack.c.bf16 %v572_v21, %v571_v16  ;;  %v640_v26 = vmul.f32 %v2726_v46, %v2539_v36  ;;  %v671_v39 = vmul.f32 %v2706_v27, %v2569_v43 }
 0x12b   :  { %1894 = vmatprep.subr.bf16.mxu0 %v700_v45  ;;  %1958 = vmatprep.subr.bf16.mxu1 %v716_v59  ;;  %v708_v19 = vpack.c.bf16 %v604_v35, %v603_v52  ;;  %v672_v31 = vmul.f32 %v2726_v46, %v2569_v43  ;;  %v623_v28 = vmul.f32 %v2706_v27, %v2526_v32 }
 0x12c   :  { %v3310_v63 = vcombine.high %v2662_v4, %v2664_v5  ;;  %v726_v15 = vpack.c.bf16 %v640_v26, %v639_v53  ;;  %v624_v16 = vmul.f32 %v2726_v46, %v2526_v32  ;;  %v655_v17 = vmul.f32 %v2706_v27, %v2556_v40 }
 0x12d   :  { %v656_v25 = vmul.f32 %v2726_v46, %v2556_v40  ;;  %v742_v60 = vpack.c.bf16 %v672_v31, %v671_v39  ;;  %v641_v61 = vmul.f32 %v2782_v51, %v2539_v36  ;;  %v642_v62 = vmul.f32 %v2798_v55, %v2539_v36 }
 0x12e   :  { %1198 = vmatprep.mubr.bf16.mxu1 %v3310_v63  ;;  %v673_v3 = vmul.f32 %v2782_v51, %v2569_v43  ;;  %1895 = vmatpush3.bf16.msra.mxu0 %v692_v22  ;;  %v718_v34 = vpack.c.bf16 %v624_v16, %v623_v28  ;;  %v674_v27 = vmul.f32 %v2798_v55, %v2569_v43 }
 0x12f   :  { %1959 = vmatpush3.bf16.msra.mxu1 %v708_v19  ;;  %v734_v47 = vpack.c.bf16 %v656_v25, %v655_v17  ;;  %v3311_v46 = vpack.c.bf16 %v2766_v38, %v2762_v23  ;;  %v3312_v45 = vpack.c.bf16 %v2776_v49, %v2770_v41  ;;  %v727_v57 = vpack.c.bf16 %v642_v62, %v641_v61 }
 0x130   :  { %v625_v42 = vmul.f32 %v2782_v51, %v2526_v32  ;;  %v626_v30 = vmul.f32 %v2798_v55, %v2526_v32  ;;  %v743_v59 = vpack.c.bf16 %v674_v27, %v673_v3  ;;  %v657_v21 = vmul.f32 %v2782_v51, %v2556_v40 }
 0x131   :  { %2008 = vmatprep.subr.bf16.mxu0 %v3311_v46  ;;  %2072 = vmatprep.subr.bf16.mxu1 %v3312_v45  ;;  %v658_v52 = vmul.f32 %v2798_v55, %v2556_v40  ;;  %v643_v23 = vmul.f32 %v2772_v44, %v2539_v36  ;;  %v3313_v38 = vcombine.low %v2654_v0, %v2656_v1 }
 0x132   :  { %v3314_v41 = vcombine.low %v2662_v4, %v2664_v5  ;;  %v719_v49 = vpack.c.bf16 %v626_v30, %v625_v42  ;;  %v644_v35 = vmul.f32 %v2790_v29, %v2539_v36  ;;  %v675_v51 = vmul.f32 %v2772_v44, %v2569_v43 }
 0x133   :  { %1102 = vmatmul.mubr.bf16.vlgmr.msra.gmra.mrb[16].mxu0 %v3313_v38  ;;  %v3315_v55 = vpack.c.bf16 %v2834_v24, %v2780_v50  ;;  %v735_v53 = vpack.c.bf16 %v658_v52, %v657_v21  ;;  %v676_v0 = vmul.f32 %v2790_v29, %v2569_v43  ;;  %v627_v1 = vmul.f32 %v2772_v44, %v2526_v32 }
 0x134   :  { %1199 = vmatmul.mubr.bf16.vlgmr.msra.gmra.mrb[16].mxu1 %v3314_v41  ;;  %v728_v4 = vpack.c.bf16 %v644_v35, %v643_v23  ;;  %v628_v5 = vmul.f32 %v2790_v29, %v2526_v32  ;;  %v659_v22 = vmul.f32 %v2772_v44, %v2556_v40  ;;  %v3316_v50 = vcombine.high %v2666_v6, %v2668_v7 }
 0x135   :  { %2009 = vmatpush3.bf16.msra.mxu0 %v3315_v55  ;;  %2073 = vmatpush3.bf16.msra.mxu1 %v733_v37  ;;  %v3317_v24 = vcombine.high %v2670_v8, %v2672_v9  ;;  %v744_v37 = vpack.c.bf16 %v676_v0, %v675_v51  ;;  %v660_v26 = vmul.f32 %v2790_v29, %v2556_v40 }
 0x136   :  { %2010 = vmatprep.subr.bf16.mxu0 %v726_v15  ;;  %2074 = vmatprep.subr.bf16.mxu1 %v742_v60  ;;  %v645_v39 = vmul.f32 %v2836_v56, %v2539_v36  ;;  %v720_v19 = vpack.c.bf16 %v628_v5, %v627_v1  ;;  %v646_v31 = vmul.f32 %v2850_v2, %v2539_v36 }
 0x137   :  { %1109 = vmatprep.mubr.bf16.mxu0 %v3316_v50  ;;  %1206 = vmatprep.mubr.bf16.mxu1 %v3317_v24  ;;  %v677_v44 = vmul.f32 %v2836_v56, %v2569_v43  ;;  %v678_v28 = vmul.f32 %v2850_v2, %v2569_v43  ;;  %v736_v63 = vpack.c.bf16 %v660_v26, %v659_v22  ;;  %v3327_v26 = vld [vmem:[#allocation14_spill] sm:$0xff] }
 0x138   :  { %v629_v15 = vmul.f32 %v2836_v56, %v2526_v32  ;;  %v630_v29 = vmul.f32 %v2850_v2, %v2526_v32  ;;  %v729_v16 = vpack.c.bf16 %v646_v31, %v645_v39  ;;  %v661_v25 = vmul.f32 %v2836_v56, %v2556_v40  ;;  %v525_v39 = vld [vmem:[#allocation2 + $0x100] sm:$0xff] }
 0x139   :  { %2011 = vmatpush3.bf16.msra.mxu0 %v718_v34  ;;  %2075 = vmatpush3.bf16.msra.mxu1 %v734_v47  ;;  %v745_v17 = vpack.c.bf16 %v678_v28, %v677_v44  ;;  %v662_v61 = vmul.f32 %v2850_v2, %v2556_v40  ;;  %v647_v62 = vmul.f32 %v2828_v33, %v2539_v36  ;;  %v526_v28 = vld [vmem:[#allocation2 + $0x108] sm:$0xff] }
 0x13a   :  { %2012 = vmatprep.subr.bf16.mxu0 %v727_v57  ;;  %2076 = vmatprep.subr.bf16.mxu1 %v743_v59  ;;  %v721_v60 = vpack.c.bf16 %v630_v29, %v629_v15  ;;  %v648_v3 = vmul.f32 %v2842_v18, %v2539_v36  ;;  %v3318_v34 = vcombine.low %v2666_v6, %v2668_v7  ;;  %v533_v15 = vld [vmem:[#allocation2 + $0x140] sm:$0xff]  ;;  %v534_v29 = vld [vmem:[#allocation2 + $0x148] sm:$0xff] }
 0x13b   :  { %v3319_v47 = vcombine.low %v2670_v8, %v2672_v9  ;;  %v679_v56 = vmul.f32 %v2828_v33, %v2569_v43  ;;  %v680_v2 = vmul.f32 %v2842_v18, %v2569_v43  ;;  %v631_v27 = vmul.f32 %v2828_v33, %v2526_v32 }
 0x13c   :  { %1110 = vmatmul.mubr.bf16.gmra.mrb[20].mxu0 %v3318_v34  ;;  %v737_v46 = vpack.c.bf16 %v662_v61, %v661_v25  ;;  %v730_v45 = vpack.c.bf16 %v648_v3, %v647_v62  ;;  %v632_v6 = vmul.f32 %v2842_v18, %v2526_v32  ;;  %v663_v8 = vmul.f32 %v2828_v33, %v2556_v40  ;;  %v541_v34 = vld [vmem:[#allocation2 + $0x180] sm:$0xff] }
 0x13d   :  { %1207 = vmatmul.mubr.bf16.gmra.mrb[20].mxu1 %v3319_v47  ;;  %2013 = vmatpush3.bf16.msra.mxu0 %v719_v49  ;;  %v746_v7 = vpack.c.bf16 %v680_v2, %v679_v56  ;;  %v664_v9 = vmul.f32 %v2842_v18, %v2556_v40  ;;  %v3320_v57 = vcombine.high %v2674_v10, %v2676_v11  ;;  %v3329_v62 = vmov 1.0|1.0   ;;  %v545_v47 = vld [vmem:[#allocation2 + $0x1a0] sm:$0xff]  ;;  %v542_v56 = vld [vmem:[#allocation2 + $0x188] sm:$0xff] }
 0x13e   :  { %2077 = vmatpush3.bf16.msra.mxu1 %v735_v53  ;;  %2014 = vmatprep.subr.bf16.mxu0 %v728_v4  ;;  %v3321_v42 = vcombine.high %v2678_v12, %v2680_v13  ;;  %v722_v30 = vpack.c.bf16 %v632_v6, %v631_v27  ;;  %v649_v59 = vmul.f32 %v2892_v58, %v2539_v36  ;;  %v546_v2 = vld [vmem:[#allocation2 + $0x1a8] sm:$0xff] }
 0x13f   :  { %2078 = vmatprep.subr.bf16.mxu1 %v744_v37  ;;  %1117 = vmatprep.mubr.bf16.mxu0 %v3320_v57  ;;  %v650_v21 = vmul.f32 %v2904_v48, %v2539_v36  ;;  %v738_v52 = vpack.c.bf16 %v664_v9, %v663_v8  ;;  %v681_v33 = vmul.f32 %v2892_v58, %v2569_v43  ;;  %v3326_v37 = vld [vmem:[#allocation13_spill] sm:$0xff]  ;;  %v553_v8 = vld [vmem:[#allocation2 + $0x1e0] sm:$0xff] }
 0x140   :  { %1214 = vmatprep.mubr.bf16.mxu1 %v3321_v42  ;;  %v682_v18 = vmul.f32 %v2904_v48, %v2569_v43  ;;  %v633_v23 = vmul.f32 %v2892_v58, %v2526_v32  ;;  %v634_v41 = vmul.f32 %v2904_v48, %v2526_v32  ;;  %v665_v49 = vmul.f32 %v2892_v58, %v2556_v40  ;;  %v550_v9 = vld [vmem:[#allocation2 + $0x1c8] sm:$0xff] }
 0x141   :  { %2015 = vmatpush3.bf16.msra.mxu0 %v720_v19  ;;  %v731_v38 = vpack.c.bf16 %v650_v21, %v649_v59  ;;  %v666_v51 = vmul.f32 %v2904_v48, %v2556_v40  ;;  %v651_v55 = vmul.f32 %v2880_v20, %v2539_v36  ;;  %v652_v0 = vmul.f32 %v2896_v54, %v2539_v36  ;;  %v554_v57 = vld [vmem:[#allocation2 + $0x1e8] sm:$0xff] }
 0x142   :  { %2079 = vmatpush3.bf16.msra.mxu1 %v736_v63  ;;  %2016 = vmatprep.subr.bf16.mxu0 %v729_v16  ;;  %v747_v35 = vpack.c.bf16 %v682_v18, %v681_v33  ;;  %v723_v53 = vpack.c.bf16 %v634_v41, %v633_v23  ;;  %v683_v1 = vmul.f32 %v2880_v20, %v2569_v43  ;;  %v530_v63 = vld [vmem:[#allocation2 + $0x128] sm:$0xff]  ;;  %v499_v33 = vld [vmem:[#allocation2 + $0x30] sm:$0xff]  ;;  %v496_v18 = vld [vmem:[#allocation2 + $0x18] sm:$0xff] }
 0x143   :  { %2080 = vmatprep.subr.bf16.mxu1 %v745_v17  ;;  %v684_v4 = vmul.f32 %v2896_v54, %v2569_v43  ;;  %v3322_v58 = vcombine.low %v2674_v10, %v2676_v11  ;;  %v3323_v48 = vcombine.low %v2678_v12, %v2680_v13  ;;  %v739_v5 = vpack.c.bf16 %v666_v51, %v665_v49  ;;  %v3324_v12 = vld [vmem:[#allocation12_spill] sm:$0xff]  ;;  %v500_v23 = vld [vmem:[#allocation2 + $0x38] sm:$0xff]  ;;  %v503_v51 = vld [vmem:[#allocation2 + $0x50] sm:$0xff] }
 0x144   :  { %v635_v22 = vmul.f32 %v2880_v20, %v2526_v32  ;;  %v636_v36 = vmul.f32 %v2896_v54, %v2526_v32  ;;  %v732_v50 = vpack.c.bf16 %v652_v0, %v651_v55  ;;  %v667_v10 = vmul.f32 %v2880_v20, %v2556_v40  ;;  %v529_v20 = vld [vmem:[#allocation2 + $0x120] sm:$0xff]  ;;  %v538_v16 = vld [vmem:[#allocation2 + $0x168] sm:$0xff]  ;;  %v507_v55 = vld [vmem:[#allocation2 + $0x70] sm:$0xff] }
 0x145   :  { %1118 = vmatmul.mubr.bf16.gmra.mrb[24].mxu0 %v3322_v58  ;;  %1215 = vmatmul.mubr.bf16.gmra.mrb[24].mxu1 %v3323_v48  ;;  %v748_v24 = vpack.c.bf16 %v684_v4, %v683_v1  ;;  %v668_v11 = vmul.f32 %v2896_v54, %v2556_v40  ;;  %v3325_v13 = vcombine.high %v2682_v14, %v3324_v12  ;;  %v508_v0 = vld [vmem:[#allocation2 + $0x78] sm:$0xff] }
 0x146   :  { %2017 = vmatpush3.bf16.msra.mxu0 %v721_v60  ;;  %2081 = vmatpush3.bf16.msra.mxu1 %v737_v46  ;;  %v724_v43 = vpack.c.bf16 %v636_v36, %v635_v22  ;;  %v3328_v32 = vcombine.high %v3326_v37, %v3327_v26  ;;  %v1800_v19 = vcombine.low %v2682_v14, %v3324_v12  ;;  %v537_v14 = vld [vmem:[#allocation2 + $0x160] sm:$0xff]  ;;  %v515_v22 = vld [vmem:[#allocation2 + $0xb0] sm:$0xff]  ;;  %v512_v36 = vld [vmem:[#allocation2 + $0x98] sm:$0xff] }
 0x147   :  { %2018 = vmatprep.subr.bf16.mxu0 %v730_v45  ;;  %2082 = vmatprep.subr.bf16.mxu1 %v746_v7  ;;  %v1802_v31 = vcombine.low %v3326_v37, %v3327_v26  ;;  %v740_v44 = vpack.c.bf16 %v668_v11, %v667_v10  ;;  %v1809_v40 = vcombine.high %v525_v39, %v529_v20  ;;  %v549_v7 = vld [vmem:[#allocation2 + $0x1c0] sm:$0xff]  ;;  %v519_v37 = vld [vmem:[#allocation2 + $0xd0] sm:$0xff] }
 0x148   :  { %1125 = vmatprep.mubr.bf16.mxu0 %v3325_v13  ;;  %1222 = vmatprep.mubr.bf16.mxu1 %v3328_v32  ;;  %v1811_v54 = vcombine.high %v526_v28, %v530_v63  ;;  %v1808_v17 = vcombine.low %v525_v39, %v529_v20  ;;  %v1810_v25 = vcombine.low %v526_v28, %v530_v63  ;;  %v523_v26 = vld [vmem:[#allocation2 + $0xf0] sm:$0xff]  ;;  %v520_v32 = vld [vmem:[#allocation2 + $0xd8] sm:$0xff] }
 0x149   :  { %v1817_v60 = vcombine.high %v533_v15, %v537_v14  ;;  %v1819_v61 = vcombine.high %v534_v29, %v538_v16  ;;  %v1816_v27 = vcombine.low %v533_v15, %v537_v14  ;;  %v1818_v46 = vcombine.low %v534_v29, %v538_v16  ;;  %v524_v39 = vld [vmem:[#allocation2 + $0xf8] sm:$0xff]  ;;  %v527_v63 = vld [vmem:[#allocation2 + $0x110] sm:$0xff] }
 0x14a   :  { %2019 = vmatpush3.bf16.msra.mxu0 %v722_v30  ;;  %2083 = vmatpush3.bf16.msra.mxu1 %v738_v52  ;;  %v1825_v45 = vcombine.high %v541_v34, %v545_v47  ;;  %v1827_v6 = vcombine.high %v542_v56, %v546_v2  ;;  %v1824_v42 = vcombine.low %v541_v34, %v545_v47  ;;  %v495_v52 = vld [vmem:[#allocation2 + $0x10] sm:$0xff]  ;;  %v532_v15 = vld [vmem:[#allocation2 + $0x138] sm:$0xff] }
 0x14b   :  { %2020 = vmatprep.subr.bf16.mxu0 %v731_v38  ;;  %2084 = vmatprep.subr.bf16.mxu1 %v747_v35  ;;  %v1826_v30 = vcombine.low %v542_v56, %v546_v2  ;;  %v1833_v59 = vcombine.high %v549_v7, %v553_v8  ;;  %v1835_v21 = vcombine.high %v550_v9, %v554_v57  ;;  %v543_v2 = vld [vmem:[#allocation2 + $0x190] sm:$0xff] }
 0x14c   :  { %v1832_v38 = vcombine.low %v549_v7, %v553_v8  ;;  %v1834_v41 = vcombine.low %v550_v9, %v554_v57  ;;  %v1781_v49 = vcombine.high %v495_v52, %v499_v33  ;;  %v1783_v35 = vcombine.high %v496_v18, %v500_v23  ;;  %v551_v57 = vld [vmem:[#allocation2 + $0x1d0] sm:$0xff] }
 0x14d   :  { %1126 = vmatmul.mubr.bf16.gmra.mrb[28].mxu0 %v1800_v19  ;;  %1223 = vmatmul.mubr.bf16.gmra.mrb[28].mxu1 %v1802_v31  ;;  %v1780_v1 = vcombine.low %v495_v52, %v499_v33  ;;  %v1782_v4 = vcombine.low %v496_v18, %v500_v23  ;;  %v1789_v58 = vcombine.high %v503_v51, %v507_v55 }
 0x14e   :  { %2021 = vmatpush3.bf16.msra.mxu0 %v723_v53  ;;  %2085 = vmatpush3.bf16.msra.mxu1 %v739_v5  ;;  %v504_v53 = vld [vmem:[#allocation2 + $0x58] sm:$0xff]  ;;  %v511_v5 = vld [vmem:[#allocation2 + $0x90] sm:$0xff]  ;;  %v1805_v20 = vcombine.high %v519_v37, %v523_v26  ;;  %v1807_v28 = vcombine.high %v520_v32, %v524_v39  ;;  %v1804_v14 = vcombine.low %v519_v37, %v523_v26 }
 0x14f   :  { %2022 = vmatprep.subr.bf16.mxu0 %v732_v50  ;;  %2086 = vmatprep.subr.bf16.mxu1 %v748_v24  ;;  %v1791_v48 = vcombine.high %v504_v53, %v508_v0  ;;  %v516_v50 = vld [vmem:[#allocation2 + $0xb8] sm:$0xff]  ;;  %v1790_v10 = vcombine.low %v504_v53, %v508_v0  ;;  %v1797_v11 = vcombine.high %v511_v5, %v515_v22 }
 0x150   :  { %1133 = vmatprep.mubr.bf16.mxu0 %v1809_v40  ;;  %1230 = vmatprep.mubr.bf16.mxu1 %v1811_v54  ;;  %v1799_v12 = vcombine.high %v512_v36, %v516_v50  ;;  %v1796_v31 = vcombine.low %v511_v5, %v515_v22  ;;  %v531_v40 = vld [vmem:[#allocation2 + $0x130] sm:$0xff]  ;;  %v528_v54 = vld [vmem:[#allocation2 + $0x118] sm:$0xff]  ;;  %v1806_v29 = vcombine.low %v520_v32, %v524_v39 }
 0x151   :  { %v1813_v16 = vcombine.high %v527_v63, %v531_v40  ;;  %v1812_v3 = vcombine.low %v527_v63, %v531_v40  ;;  %v1814_v34 = vcombine.low %v528_v54, %v532_v15 }
 0x152   :  { %2023 = vmatpush3.bf16.msra.mxu0 %v724_v43  ;;  %2087 = vmatpush3.bf16.msra.mxu1 %v740_v44  ;;  %v1788_v43 = vcombine.low %v503_v51, %v507_v55  ;;  %v1798_v44 = vcombine.low %v512_v36, %v516_v50 }
 0x153   :  { %2230 = vmatprep.subr.msk.bf16.mxu0 %vm2550_vm11, %v3329_v62 }
 0x155   :  { %1134 = vmatmul.mubr.bf16.gmra.mrb[32].mxu0 %v1808_v17  ;;  %1231 = vmatmul.mubr.bf16.gmra.mrb[32].mxu1 %v1810_v25  ;;  %v1815_v17 = vcombine.high %v528_v54, %v532_v15  ;;  %v535_v25 = vld [vmem:[#allocation2 + $0x150] sm:$0xff] }
 0x156   :  { %1141 = vmatprep.mubr.bf16.mxu0 %v1817_v60  ;;  %1238 = vmatprep.mubr.bf16.mxu1 %v1819_v61  ;;  %v539_v60 = vld [vmem:[#allocation2 + $0x170] sm:$0xff]  ;;  %v536_v61 = vld [vmem:[#allocation2 + $0x158] sm:$0xff] }
 0x157   :  { %v1821_v47 = vcombine.high %v535_v25, %v539_v60 }
 0x15d   :  { %1142 = vmatmul.mubr.bf16.gmra.mrb[36].mxu0 %v1816_v27  ;;  %1239 = vmatmul.mubr.bf16.gmra.mrb[36].mxu1 %v1818_v46  ;;  %v547_v27 = vld [vmem:[#allocation2 + $0x1b0] sm:$0xff]  ;;  %v544_v46 = vld [vmem:[#allocation2 + $0x198] sm:$0xff] }
 0x15e   :  { %1149 = vmatprep.mubr.bf16.mxu0 %v1825_v45  ;;  %1246 = vmatprep.mubr.bf16.mxu1 %v1827_v6  ;;  %v548_v45 = vld [vmem:[#allocation2 + $0x1b8] sm:$0xff]  ;;  %v1820_v6 = vcombine.low %v535_v25, %v539_v60  ;;  %v1829_v8 = vcombine.high %v543_v2, %v547_v27 }
 0x15f   :  { %v1831_v9 = vcombine.high %v544_v46, %v548_v45  ;;  %v1830_v52 = vcombine.low %v544_v46, %v548_v45 }
 0x165   :  { %1150 = vmatmul.mubr.bf16.gmra.mrb[40].mxu0 %v1824_v42  ;;  %1247 = vmatmul.mubr.bf16.gmra.mrb[40].mxu1 %v1826_v30  ;;  %v555_v42 = vld [vmem:[#allocation2 + $0x1f0] sm:$0xff]  ;;  %v552_v30 = vld [vmem:[#allocation2 + $0x1d8] sm:$0xff] }
 0x166   :  { %1157 = vmatprep.mubr.bf16.mxu0 %v1833_v59  ;;  %1254 = vmatprep.mubr.bf16.mxu1 %v1835_v21  ;;  %v556_v59 = vld [vmem:[#allocation2 + $0x1f8] sm:$0xff]  ;;  %v1828_v21 = vcombine.low %v543_v2, %v547_v27  ;;  %v1837_v33 = vcombine.high %v551_v57, %v555_v42  ;;  %v1836_v23 = vcombine.low %v551_v57, %v555_v42 }
 0x167   :  { %v1839_v18 = vcombine.high %v552_v30, %v556_v59 }
 0x16d   :  { %1158 = vmatmul.mubr.bf16.gmra.mrb[44].mxu0 %v1832_v38  ;;  %1255 = vmatmul.mubr.bf16.gmra.mrb[44].mxu1 %v1834_v41  ;;  %v1838_v38 = vcombine.low %v552_v30, %v556_v59 }
 0x16e   :  { %1295 = vmatprep.mubr.bf16.mxu0 %v1781_v49  ;;  %1392 = vmatprep.mubr.bf16.mxu1 %v1783_v35 }
 0x175   :  { %1296 = vmatmul.mubr.bf16.vlgmr.msra.gmra.mrb[48].mxu0 %v1780_v1  ;;  %1393 = vmatmul.mubr.bf16.vlgmr.msra.gmra.mrb[48].mxu1 %v1782_v4 }
 0x176   :  { %1303 = vmatprep.mubr.bf16.mxu0 %v1789_v58  ;;  %1400 = vmatprep.mubr.bf16.mxu1 %v1791_v48 }
 0x177   :  { %2231 = vmatpush3.bf16.msk.msra.mxu0 %vm2550_vm11, %v3329_v62  ;;  %vm2446_vm11 = vmmov 0  }
 0x178   :  { %2232 = vmatprep.subr.msk.bf16.mxu0 %vm2582_vm3, %v3329_v62 }
 0x17b   :  { %2233 = vmatpush3.bf16.msk.msra.mxu0 %vm2582_vm3, %v3329_v62 }
 0x17c   :  { %2234 = vmatprep.subr.msk.bf16.mxu0 %vm2600_vm6, %v3329_v62 }
 0x17d   :  { %1304 = vmatmul.mubr.bf16.gmra.mrb[52].mxu0 %v1788_v43  ;;  %1401 = vmatmul.mubr.bf16.gmra.mrb[52].mxu1 %v1790_v10 }
 0x17e   :  { %1311 = vmatprep.mubr.bf16.mxu0 %v1797_v11  ;;  %1408 = vmatprep.mubr.bf16.mxu1 %v1799_v12 }
 0x17f   :  { %2235 = vmatpush3.bf16.msk.msra.mxu0 %vm2600_vm6, %v3329_v62 }
 0x180   :  { %2236 = vmatprep.subr.msk.bf16.mxu0 %vm2644_vm14, %v3329_v62 }
 0x183   :  { %2237 = vmatpush3.bf16.msk.msra.mxu0 %vm2644_vm14, %v3329_v62  ;;  %v540_v62 = vld [vmem:[#allocation2 + $0x178] sm:$0xff] }
 0x184   :  { %v1823_v56 = vcombine.high %v536_v61, %v540_v62  ;;  %v1822_v7 = vcombine.low %v536_v61, %v540_v62 }
 0x185   :  { %1312 = vmatmul.mubr.bf16.gmra.mrb[56].mxu0 %v1796_v31  ;;  %1409 = vmatmul.mubr.bf16.gmra.mrb[56].mxu1 %v1798_v44 }
 0x186   :  { %1319 = vmatprep.mubr.bf16.mxu0 %v1805_v20  ;;  %1416 = vmatprep.mubr.bf16.mxu1 %v1807_v28 }
 0x18d   :  { %1320 = vmatmul.mubr.bf16.gmra.mrb[60].mxu0 %v1804_v14  ;;  %1417 = vmatmul.mubr.bf16.gmra.mrb[60].mxu1 %v1806_v29 }
 0x18e   :  { %1327 = vmatprep.mubr.bf16.mxu0 %v1813_v16  ;;  %1424 = vmatprep.mubr.bf16.mxu1 %v1815_v17 }
 0x195   :  { %1328 = vmatmul.mubr.bf16.gmra.mrb[64].mxu0 %v1812_v3  ;;  %1425 = vmatmul.mubr.bf16.gmra.mrb[64].mxu1 %v1814_v34 }
 0x196   :  { %1335 = vmatprep.mubr.bf16.mxu0 %v1821_v47  ;;  %1432 = vmatprep.mubr.bf16.mxu1 %v1823_v56 }
 0x19d   :  { %1336 = vmatmul.mubr.bf16.gmra.mrb[68].mxu0 %v1820_v6  ;;  %1433 = vmatmul.mubr.bf16.gmra.mrb[68].mxu1 %v1822_v7 }
 0x19e   :  { %1343 = vmatprep.mubr.bf16.mxu0 %v1829_v8  ;;  %1440 = vmatprep.mubr.bf16.mxu1 %v1831_v9 }
 0x1a5   :  { %1344 = vmatmul.mubr.bf16.gmra.mrb[72].mxu0 %v1828_v21  ;;  %1441 = vmatmul.mubr.bf16.gmra.mrb[72].mxu1 %v1830_v52 }
 0x1a6   :  { %1351 = vmatprep.mubr.bf16.mxu0 %v1837_v33  ;;  %1448 = vmatprep.mubr.bf16.mxu1 %v1839_v18 }
 0x1ad   :  { %1352 = vmatmul.mubr.bf16.gmra.mrb[76].mxu0 %v1836_v23  ;;  %1449 = vmatmul.mubr.bf16.gmra.mrb[76].mxu1 %v1838_v38 }
 0x1e3   :  { %v3126_v41 = vpop.f32.mrb[0].mxu1 }
 0x1e4   :  { %v3128_v49 = vpop.f32.mrb[1].mxu1 }
 0x1e5   :  { %v3130_v35 = vpop.f32.mrb[2].mxu1 }
 0x1e6   :  { %v2352_v51 = vpack.c.bf16 %v3130_v35, %v3126_v41  ;;  %v3134_v55 = vpop.f32.mrb[3].mxu1  ;;  %v492_v41 = vld [vmem:[%s3275_s1] sm:$0x1] }
 0x1e7   :  { %v2349_v53 = vpack.c.bf16 %v3134_v55, %v3128_v49 }
 0x1eb   :  { %v3138_v0 = vpop.f32.mrb[4].mxu1 }
 0x1ec   :  { %v3140_v1 = vpop.f32.mrb[5].mxu1 }
 0x1ed   :  { %v3142_v4 = vpop.f32.mrb[6].mxu1 }
 0x1ee   :  { %v2358_v58 = vpack.c.bf16 %v3142_v4, %v3138_v0  ;;  %v3146_v48 = vpop.f32.mrb[7].mxu1 }
 0x1ef   :  { %v2355_v5 = vpack.c.bf16 %v3146_v48, %v3140_v1 }
 0x1f3   :  { %v3150_v22 = vpop.f32.mrb[8].mxu1 }
 0x1f4   :  { %v3152_v36 = vpop.f32.mrb[9].mxu1 }
 0x1f5   :  { %v3154_v50 = vpop.f32.mrb[10].mxu1 }
 0x1f6   :  { %v2364_v24 = vpack.c.bf16 %v3154_v50, %v3150_v22  ;;  %v3158_v43 = vpop.f32.mrb[11].mxu1 }
 0x1f7   :  { %v2361_v10 = vpack.c.bf16 %v3158_v43, %v3152_v36 }
 0x1fb   :  { %v3162_v11 = vpop.f32.mrb[12].mxu1 }
 0x1fc   :  { %v3164_v12 = vpop.f32.mrb[13].mxu1 }
 0x1fd   :  { %v3166_v13 = vpop.f32.mrb[14].mxu1 }
 0x1fe   :  { %v2370_v37 = vpack.c.bf16 %v3166_v13, %v3162_v11  ;;  %v3170_v26 = vpop.f32.mrb[15].mxu1 }
 0x1ff   :  { %v2367_v32 = vpack.c.bf16 %v3170_v26, %v3164_v12 }
 0x206   :  { %v1896_v39 = vpop.f32.mrb[16].mxu0 }
 0x207   :  { %v1960_v19 = vpop.f32.mrb[16].mxu1  ;;  %v1897_v31 = vpop.f32.mrb[17].mxu0 }
 0x208   :  { %v1961_v44 = vpop.f32.mrb[17].mxu1  ;;  %v1898_v20 = vadd.f32 %v1897_v31, %v1896_v39  ;;  %v1899_v63 = vpop.f32.mrb[18].mxu0 }
 0x209   :  { %v1962_v28 = vadd.f32 %v1961_v44, %v1960_v19  ;;  %v1963_v40 = vpop.f32.mrb[18].mxu1  ;;  %v1900_v54 = vpop.f32.mrb[19].mxu0 }
 0x20a   :  { %v1964_v15 = vpop.f32.mrb[19].mxu1  ;;  %v1901_v29 = vadd.f32 %v1900_v54, %v1899_v63 }
 0x20b   :  { %v3174_v14 = vadd.f32 %v1962_v28, %v1898_v20  ;;  %v1965_v16 = vadd.f32 %v1964_v15, %v1963_v40 }
 0x20d   :  { %v3176_v17 = vadd.f32 %v1965_v16, %v1901_v29 }
 0x20f   :  { %v1902_v25 = vpop.f32.mrb[20].mxu0 }
 0x210   :  { %v1966_v60 = vpop.f32.mrb[20].mxu1  ;;  %v1903_v61 = vpop.f32.mrb[21].mxu0 }
 0x211   :  { %v1967_v62 = vpop.f32.mrb[21].mxu1  ;;  %v1904_v3 = vadd.f32 %v1903_v61, %v1902_v25  ;;  %v1905_v47 = vpop.f32.mrb[22].mxu0 }
 0x212   :  { %v1968_v34 = vadd.f32 %v1967_v62, %v1966_v60  ;;  %v1969_v56 = vpop.f32.mrb[22].mxu1  ;;  %v1906_v2 = vpop.f32.mrb[23].mxu0 }
 0x213   :  { %v1970_v27 = vpop.f32.mrb[23].mxu1  ;;  %v1907_v45 = vadd.f32 %v1906_v2, %v1905_v47 }
 0x214   :  { %v3178_v46 = vadd.f32 %v1968_v34, %v1904_v3  ;;  %v1971_v6 = vadd.f32 %v1970_v27, %v1969_v56 }
 0x216   :  { %v3180_v7 = vadd.f32 %v1971_v6, %v1907_v45 }
 0x218   :  { %v1908_v8 = vpop.f32.mrb[24].mxu0  ;;  %v1972_v9 = vpop.f32.mrb[24].mxu1 }
 0x219   :  { %v1909_v57 = vpop.f32.mrb[25].mxu0  ;;  %v1973_v42 = vpop.f32.mrb[25].mxu1 }
 0x21a   :  { %v1910_v30 = vadd.f32 %v1909_v57, %v1908_v8  ;;  %v1974_v59 = vadd.f32 %v1973_v42, %v1972_v9  ;;  %v1911_v21 = vpop.f32.mrb[26].mxu0  ;;  %v1975_v52 = vpop.f32.mrb[26].mxu1 }
 0x21b   :  { %v1912_v33 = vpop.f32.mrb[27].mxu0  ;;  %v1976_v18 = vpop.f32.mrb[27].mxu1 }
 0x21c   :  { %v3182_v23 = vadd.f32 %v1974_v59, %v1910_v30  ;;  %v1913_v38 = vadd.f32 %v1912_v33, %v1911_v21  ;;  %v1977_v39 = vadd.f32 %v1976_v18, %v1975_v52 }
 0x21e   :  { %v3184_v19 = vadd.f32 %v1977_v39, %v1913_v38 }
 0x220   :  { %v1914_v31 = vpop.f32.mrb[28].mxu0  ;;  %v1978_v44 = vpop.f32.mrb[28].mxu1 }
 0x221   :  { %v1915_v20 = vpop.f32.mrb[29].mxu0  ;;  %v1979_v28 = vpop.f32.mrb[29].mxu1 }
 0x222   :  { %v1916_v63 = vadd.f32 %v1915_v20, %v1914_v31  ;;  %v1980_v40 = vadd.f32 %v1979_v28, %v1978_v44  ;;  %v1917_v54 = vpop.f32.mrb[30].mxu0  ;;  %v1981_v15 = vpop.f32.mrb[30].mxu1 }
 0x223   :  { %v1918_v29 = vpop.f32.mrb[31].mxu0  ;;  %v1982_v16 = vpop.f32.mrb[31].mxu1 }
 0x224   :  { %v3186_v25 = vadd.f32 %v1980_v40, %v1916_v63  ;;  %v1919_v60 = vadd.f32 %v1918_v29, %v1917_v54  ;;  %v1983_v61 = vadd.f32 %v1982_v16, %v1981_v15 }
 0x226   :  { %v3188_v62 = vadd.f32 %v1983_v61, %v1919_v60 }
 0x228   :  { %v1920_v3 = vpop.f32.mrb[32].mxu0  ;;  %v1984_v34 = vpop.f32.mrb[32].mxu1 }
 0x229   :  { %v1921_v47 = vpop.f32.mrb[33].mxu0  ;;  %v1985_v56 = vpop.f32.mrb[33].mxu1 }
 0x22a   :  { %v1922_v2 = vadd.f32 %v1921_v47, %v1920_v3  ;;  %v1986_v27 = vadd.f32 %v1985_v56, %v1984_v34  ;;  %v1923_v45 = vpop.f32.mrb[34].mxu0  ;;  %v1987_v6 = vpop.f32.mrb[34].mxu1 }
 0x22b   :  { %v1924_v8 = vpop.f32.mrb[35].mxu0  ;;  %v1988_v9 = vpop.f32.mrb[35].mxu1 }
 0x22c   :  { %v3190_v57 = vadd.f32 %v1986_v27, %v1922_v2  ;;  %v1925_v42 = vadd.f32 %v1924_v8, %v1923_v45  ;;  %v1989_v30 = vadd.f32 %v1988_v9, %v1987_v6 }
 0x22e   :  { %v3192_v59 = vadd.f32 %v1989_v30, %v1925_v42 }
 0x230   :  { %v1926_v21 = vpop.f32.mrb[36].mxu0  ;;  %v1990_v52 = vpop.f32.mrb[36].mxu1 }
 0x231   :  { %v1927_v33 = vpop.f32.mrb[37].mxu0  ;;  %v1991_v18 = vpop.f32.mrb[37].mxu1 }
 0x232   :  { %v1928_v38 = vadd.f32 %v1927_v33, %v1926_v21  ;;  %v1992_v39 = vadd.f32 %v1991_v18, %v1990_v52  ;;  %v1929_v31 = vpop.f32.mrb[38].mxu0  ;;  %v1993_v44 = vpop.f32.mrb[38].mxu1 }
 0x233   :  { %v1930_v20 = vpop.f32.mrb[39].mxu0  ;;  %v1994_v28 = vpop.f32.mrb[39].mxu1 }
 0x234   :  { %v3194_v63 = vadd.f32 %v1992_v39, %v1928_v38  ;;  %v1931_v40 = vadd.f32 %v1930_v20, %v1929_v31  ;;  %v1995_v54 = vadd.f32 %v1994_v28, %v1993_v44 }
 0x236   :  { %v3196_v15 = vadd.f32 %v1995_v54, %v1931_v40 }
 0x238   :  { %v1932_v29 = vpop.f32.mrb[40].mxu0  ;;  %v1996_v16 = vpop.f32.mrb[40].mxu1 }
 0x239   :  { %v1933_v60 = vpop.f32.mrb[41].mxu0  ;;  %v1997_v61 = vpop.f32.mrb[41].mxu1 }
 0x23a   :  { %v1934_v3 = vadd.f32 %v1933_v60, %v1932_v29  ;;  %v1998_v34 = vadd.f32 %v1997_v61, %v1996_v16  ;;  %v1935_v47 = vpop.f32.mrb[42].mxu0  ;;  %v1999_v56 = vpop.f32.mrb[42].mxu1 }
 0x23b   :  { %v1936_v2 = vpop.f32.mrb[43].mxu0  ;;  %v2000_v27 = vpop.f32.mrb[43].mxu1 }
 0x23c   :  { %v3198_v45 = vadd.f32 %v1998_v34, %v1934_v3  ;;  %v1937_v6 = vadd.f32 %v1936_v2, %v1935_v47  ;;  %v2001_v8 = vadd.f32 %v2000_v27, %v1999_v56 }
 0x23e   :  { %v3200_v9 = vadd.f32 %v2001_v8, %v1937_v6 }
 0x240   :  { %v1938_v42 = vpop.f32.mrb[44].mxu0  ;;  %v2002_v30 = vpop.f32.mrb[44].mxu1 }
 0x241   :  { %v1939_v21 = vpop.f32.mrb[45].mxu0  ;;  %v2003_v52 = vpop.f32.mrb[45].mxu1 }
 0x242   :  { %v1940_v33 = vadd.f32 %v1939_v21, %v1938_v42  ;;  %v2004_v18 = vadd.f32 %v2003_v52, %v2002_v30  ;;  %v1941_v38 = vpop.f32.mrb[46].mxu0  ;;  %v2005_v39 = vpop.f32.mrb[46].mxu1 }
 0x243   :  { %v1942_v31 = vpop.f32.mrb[47].mxu0  ;;  %v2006_v44 = vpop.f32.mrb[47].mxu1 }
 0x244   :  { %v3202_v20 = vadd.f32 %v2004_v18, %v1940_v33  ;;  %v1943_v28 = vadd.f32 %v1942_v31, %v1941_v38  ;;  %v2007_v40 = vadd.f32 %v2006_v44, %v2005_v39 }
 0x246   :  { %v3204_v54 = vadd.f32 %v2007_v40, %v1943_v28 }
 0x248   :  { %v2024_v29 = vpop.f32.mrb[48].mxu0  ;;  %v2088_v16 = vpop.f32.mrb[48].mxu1 }
 0x249   :  { %v2025_v60 = vpop.f32.mrb[49].mxu0  ;;  %v2089_v61 = vpop.f32.mrb[49].mxu1 }
 0x24a   :  { %v2026_v3 = vadd.f32 %v2025_v60, %v2024_v29  ;;  %v2090_v34 = vadd.f32 %v2089_v61, %v2088_v16  ;;  %v2027_v47 = vpop.f32.mrb[50].mxu0  ;;  %v2091_v56 = vpop.f32.mrb[50].mxu1 }
 0x24b   :  { %v2028_v2 = vpop.f32.mrb[51].mxu0  ;;  %v2092_v27 = vpop.f32.mrb[51].mxu1 }
 0x24c   :  { %v1298_v6 = vadd.f32 %v2026_v3, %v3174_v14  ;;  %v2029_v8 = vadd.f32 %v2028_v2, %v2027_v47  ;;  %v2093_v42 = vadd.f32 %v2092_v27, %v2091_v56 }
 0x24e   :  { %v1395_v30 = vadd.f32 %v2090_v34, %v1298_v6  ;;  %v1301_v21 = vadd.f32 %v2029_v8, %v3176_v17 }
 0x250   :  { %v1398_v52 = vadd.f32 %v2093_v42, %v1301_v21  ;;  %v2030_v33 = vpop.f32.mrb[52].mxu0  ;;  %v2094_v18 = vpop.f32.mrb[52].mxu1 }
 0x251   :  { %v2031_v38 = vpop.f32.mrb[53].mxu0  ;;  %v2095_v39 = vpop.f32.mrb[53].mxu1 }
 0x252   :  { %v1457_v31 = vpack.c.bf16 %v1398_v52, %v1395_v30  ;;  %v2032_v44 = vadd.f32 %v2031_v38, %v2030_v33  ;;  %v2096_v28 = vadd.f32 %v2095_v39, %v2094_v18  ;;  %v2033_v40 = vpop.f32.mrb[54].mxu0  ;;  %v2097_v29 = vpop.f32.mrb[54].mxu1 }
 0x253   :  { %v2034_v16 = vpop.f32.mrb[55].mxu0  ;;  %v2098_v60 = vpop.f32.mrb[55].mxu1 }
 0x254   :  { %v1306_v61 = vadd.f32 %v2032_v44, %v3178_v46  ;;  %v2035_v14 = vadd.f32 %v2034_v16, %v2033_v40  ;;  %v2099_v3 = vadd.f32 %v2098_v60, %v2097_v29  ;;  %2238 = vmatprep.mubr.msk.bf16.mxu0 %vm241_vm0, %v1457_v31 }
 0x256   :  { %v1403_v34 = vadd.f32 %v2096_v28, %v1306_v61  ;;  %v1309_v17 = vadd.f32 %v2035_v14, %v3180_v7 }
 0x258   :  { %v1406_v47 = vadd.f32 %v2099_v3, %v1309_v17  ;;  %v2036_v56 = vpop.f32.mrb[56].mxu0  ;;  %v2100_v2 = vpop.f32.mrb[56].mxu1 }
 0x259   :  { %v2037_v27 = vpop.f32.mrb[57].mxu0  ;;  %v2101_v6 = vpop.f32.mrb[57].mxu1 }
 0x25a   :  { %v1458_v8 = vpack.c.bf16 %v1406_v47, %v1403_v34  ;;  %v2038_v42 = vadd.f32 %v2037_v27, %v2036_v56  ;;  %v2102_v30 = vadd.f32 %v2101_v6, %v2100_v2  ;;  %v2039_v21 = vpop.f32.mrb[58].mxu0  ;;  %v2103_v52 = vpop.f32.mrb[58].mxu1 }
 0x25b   :  { %v2040_v33 = vpop.f32.mrb[59].mxu0  ;;  %v2104_v18 = vpop.f32.mrb[59].mxu1 }
 0x25c   :  { %v1314_v46 = vadd.f32 %v2038_v42, %v3182_v23  ;;  %v2041_v38 = vadd.f32 %v2040_v33, %v2039_v21  ;;  %v2105_v39 = vadd.f32 %v2104_v18, %v2103_v52  ;;  %2239 = vmatmul.mubr.msk.bf16.vlgmr.msra.gmra.mrb[80].mxu0 %vm241_vm0, %v1458_v8 }
 0x25e   :  { %v1411_v31 = vadd.f32 %v2102_v30, %v1314_v46  ;;  %v1317_v7 = vadd.f32 %v2041_v38, %v3184_v19 }
 0x260   :  { %v1414_v44 = vadd.f32 %v2105_v39, %v1317_v7  ;;  %v2042_v28 = vpop.f32.mrb[60].mxu0  ;;  %v2106_v40 = vpop.f32.mrb[60].mxu1 }
 0x261   :  { %v2043_v29 = vpop.f32.mrb[61].mxu0  ;;  %v2107_v16 = vpop.f32.mrb[61].mxu1 }
 0x262   :  { %v1459_v60 = vpack.c.bf16 %v1414_v44, %v1411_v31  ;;  %v2044_v61 = vadd.f32 %v2043_v29, %v2042_v28  ;;  %v2108_v14 = vadd.f32 %v2107_v16, %v2106_v40  ;;  %v2045_v3 = vpop.f32.mrb[62].mxu0  ;;  %v2109_v34 = vpop.f32.mrb[62].mxu1 }
 0x263   :  { %v2046_v17 = vpop.f32.mrb[63].mxu0  ;;  %v2110_v47 = vpop.f32.mrb[63].mxu1 }
 0x264   :  { %v1322_v23 = vadd.f32 %v2044_v61, %v3186_v25  ;;  %v2047_v56 = vadd.f32 %v2046_v17, %v2045_v3  ;;  %v2111_v2 = vadd.f32 %v2110_v47, %v2109_v34  ;;  %2242 = vmatprep.mubr.msk.bf16.mxu0 %vm241_vm0, %v1459_v60 }
 0x266   :  { %v1419_v27 = vadd.f32 %v2108_v14, %v1322_v23  ;;  %v1325_v19 = vadd.f32 %v2047_v56, %v3188_v62 }
 0x268   :  { %v1422_v6 = vadd.f32 %v2111_v2, %v1325_v19  ;;  %v2048_v8 = vpop.f32.mrb[64].mxu0  ;;  %v2112_v42 = vpop.f32.mrb[64].mxu1 }
 0x269   :  { %v2049_v30 = vpop.f32.mrb[65].mxu0  ;;  %v2113_v21 = vpop.f32.mrb[65].mxu1 }
 0x26a   :  { %v1460_v52 = vpack.c.bf16 %v1422_v6, %v1419_v27  ;;  %v2050_v33 = vadd.f32 %v2049_v30, %v2048_v8  ;;  %v2114_v18 = vadd.f32 %v2113_v21, %v2112_v42  ;;  %v2051_v46 = vpop.f32.mrb[66].mxu0  ;;  %v2115_v38 = vpop.f32.mrb[66].mxu1 }
 0x26b   :  { %v2052_v39 = vpop.f32.mrb[67].mxu0  ;;  %v2116_v31 = vpop.f32.mrb[67].mxu1 }
 0x26c   :  { %v1330_v25 = vadd.f32 %v2050_v33, %v3190_v57  ;;  %v2053_v7 = vadd.f32 %v2052_v39, %v2051_v46  ;;  %v2117_v44 = vadd.f32 %v2116_v31, %v2115_v38  ;;  %2243 = vmatmul.mubr.msk.bf16.gmra.mrb[84].mxu0 %vm241_vm0, %v1460_v52 }
 0x26e   :  { %v1427_v28 = vadd.f32 %v2114_v18, %v1330_v25  ;;  %v1333_v62 = vadd.f32 %v2053_v7, %v3192_v59 }
 0x270   :  { %v1430_v40 = vadd.f32 %v2117_v44, %v1333_v62  ;;  %v2054_v29 = vpop.f32.mrb[68].mxu0  ;;  %v2118_v16 = vpop.f32.mrb[68].mxu1 }
 0x271   :  { %v2055_v60 = vpop.f32.mrb[69].mxu0  ;;  %v2119_v61 = vpop.f32.mrb[69].mxu1 }
 0x272   :  { %v1461_v14 = vpack.c.bf16 %v1430_v40, %v1427_v28  ;;  %v2056_v3 = vadd.f32 %v2055_v60, %v2054_v29  ;;  %v2120_v34 = vadd.f32 %v2119_v61, %v2118_v16  ;;  %v2057_v17 = vpop.f32.mrb[70].mxu0  ;;  %v2121_v47 = vpop.f32.mrb[70].mxu1 }
 0x273   :  { %v2058_v23 = vpop.f32.mrb[71].mxu0  ;;  %v2122_v56 = vpop.f32.mrb[71].mxu1 }
 0x274   :  { %v1338_v57 = vadd.f32 %v2056_v3, %v3194_v63  ;;  %v2059_v2 = vadd.f32 %v2058_v23, %v2057_v17  ;;  %v2123_v27 = vadd.f32 %v2122_v56, %v2121_v47  ;;  %2246 = vmatprep.mubr.msk.bf16.mxu0 %vm241_vm0, %v1461_v14 }
 0x276   :  { %v1435_v19 = vadd.f32 %v2120_v34, %v1338_v57  ;;  %v1341_v59 = vadd.f32 %v2059_v2, %v3196_v15 }
 0x278   :  { %v1438_v6 = vadd.f32 %v2123_v27, %v1341_v59  ;;  %v2060_v8 = vpop.f32.mrb[72].mxu0  ;;  %v2124_v42 = vpop.f32.mrb[72].mxu1  ;;  %v2447_v59 = vmov 0.0  }
 0x279   :  { %v2061_v30 = vpop.f32.mrb[73].mxu0  ;;  %v2125_v21 = vpop.f32.mrb[73].mxu1  ;;  %2286 = vmatprep.mubr.msk.f32.mxu1 %vm2446_vm11, %v2447_v59 }
 0x27a   :  { %v1462_v52 = vpack.c.bf16 %v1438_v6, %v1435_v19  ;;  %v2062_v33 = vadd.f32 %v2061_v30, %v2060_v8  ;;  %v2126_v18 = vadd.f32 %v2125_v21, %v2124_v42  ;;  %v2063_v46 = vpop.f32.mrb[74].mxu0  ;;  %v2127_v38 = vpop.f32.mrb[74].mxu1  ;;  %v2445_v19 = vmov 0.0|0.0  }
 0x27b   :  { %v2064_v39 = vpop.f32.mrb[75].mxu0  ;;  %v2128_v31 = vpop.f32.mrb[75].mxu1  ;;  %2324 = vmatprep.subr.bf16.mxu1 %v2445_v19 }
 0x27c   :  { %v1346_v63 = vadd.f32 %v2062_v33, %v3198_v45  ;;  %v2065_v25 = vadd.f32 %v2064_v39, %v2063_v46  ;;  %v2129_v7 = vadd.f32 %v2128_v31, %v2127_v38  ;;  %2247 = vmatmul.mubr.msk.bf16.gmra.mrb[88].mxu0 %vm241_vm0, %v1462_v52 }
 0x27e   :  { %v1443_v44 = vadd.f32 %v2126_v18, %v1346_v63  ;;  %v1349_v15 = vadd.f32 %v2065_v25, %v3200_v9 }
 0x280   :  { %v1446_v28 = vadd.f32 %v2129_v7, %v1349_v15  ;;  %v2066_v62 = vpop.f32.mrb[76].mxu0  ;;  %v2130_v40 = vpop.f32.mrb[76].mxu1 }
 0x281   :  { %v2067_v29 = vpop.f32.mrb[77].mxu0  ;;  %v2131_v16 = vpop.f32.mrb[77].mxu1 }
 0x282   :  { %v1463_v60 = vpack.c.bf16 %v1446_v28, %v1443_v44  ;;  %v2068_v61 = vadd.f32 %v2067_v29, %v2066_v62  ;;  %v2132_v14 = vadd.f32 %v2131_v16, %v2130_v40  ;;  %v2069_v3 = vpop.f32.mrb[78].mxu0  ;;  %v2133_v34 = vpop.f32.mrb[78].mxu1 }
 0x283   :  { %v2070_v17 = vpop.f32.mrb[79].mxu0  ;;  %v2134_v47 = vpop.f32.mrb[79].mxu1 }
 0x284   :  { %v1354_v45 = vadd.f32 %v2068_v61, %v3202_v20  ;;  %v2071_v23 = vadd.f32 %v2070_v17, %v2069_v3  ;;  %v2135_v56 = vadd.f32 %v2134_v47, %v2133_v34  ;;  %2250 = vmatprep.mubr.msk.bf16.mxu0 %vm241_vm0, %v1463_v60  ;;  %v1586_v60 = vld [vmem:[%s3275_s1 + $0x1] sm:$0x1] }
 0x286   :  { %v1451_v57 = vadd.f32 %v2132_v14, %v1354_v45  ;;  %v1357_v9 = vadd.f32 %v2071_v23, %v3204_v54 }
 0x288   :  { %v1454_v2 = vadd.f32 %v2135_v56, %v1357_v9 }
 0x28a   :  { %v1464_v27 = vpack.c.bf16 %v1454_v2, %v1451_v57 }
 0x28c   :  { %2251 = vmatmul.mubr.msk.bf16.gmra.mrb[92].mxu0 %vm241_vm0, %v1464_v27  ;;  %vm1727_vm0 = vcmask 57344  }
 0x32f   :  { %v2240_v6 = vpop.f32.mrb[80].mxu0 }
 0x330   :  { %v1523_v8 = vpop.f32.mrb[81].mxu0 }
 0x331   :  { %v2241_v20 = vpop.f32.mrb[82].mxu0 }
 0x332   :  { %v2328_v42 = vpack.c.bf16 %v2241_v20, %v2240_v6  ;;  %v1526_v30 = vpop.f32.mrb[83].mxu0 }
 0x333   :  { %v2325_v21 = vpack.c.bf16 %v1526_v30, %v1523_v8 }
 0x335   :  { %2326 = vmatpush3.bf16.msra.mxu1 %v2325_v21 }
 0x336   :  { %2327 = vmatprep.subr.bf16.mxu1 %v2445_v19 }
 0x339   :  { %2329 = vmatpush3.bf16.msra.mxu1 %v2328_v42 }
 0x33a   :  { %2330 = vmatprep.subr.bf16.mxu1 %v2445_v19 }
 0x33f   :  { %v2244_v54 = vpop.f32.mrb[84].mxu0 }
 0x340   :  { %v1539_v52 = vpop.f32.mrb[85].mxu0 }
 0x341   :  { %v2245_v33 = vpop.f32.mrb[86].mxu0 }
 0x342   :  { %v2334_v18 = vpack.c.bf16 %v2245_v33, %v2244_v54  ;;  %v1542_v46 = vpop.f32.mrb[87].mxu0 }
 0x343   :  { %v2331_v38 = vpack.c.bf16 %v1542_v46, %v1539_v52 }
 0x345   :  { %2332 = vmatpush3.bf16.msra.mxu1 %v2331_v38 }
 0x346   :  { %2333 = vmatprep.subr.bf16.mxu1 %v2445_v19 }
 0x349   :  { %2335 = vmatpush3.bf16.msra.mxu1 %v2334_v18 }
 0x34a   :  { %2336 = vmatprep.subr.bf16.mxu1 %v2445_v19 }
 0x34f   :  { %v2248_v39 = vpop.f32.mrb[88].mxu0 }
 0x350   :  { %v1555_v31 = vpop.f32.mrb[89].mxu0 }
 0x351   :  { %v2249_v63 = vpop.f32.mrb[90].mxu0 }
 0x352   :  { %v2340_v25 = vpack.c.bf16 %v2249_v63, %v2248_v39  ;;  %v1558_v7 = vpop.f32.mrb[91].mxu0 }
 0x353   :  { %v2337_v44 = vpack.c.bf16 %v1558_v7, %v1555_v31 }
 0x355   :  { %2338 = vmatpush3.bf16.msra.mxu1 %v2337_v44 }
 0x356   :  { %2339 = vmatprep.subr.bf16.mxu1 %v2445_v19 }
 0x359   :  { %2341 = vmatpush3.bf16.msra.mxu1 %v2340_v25 }
 0x35a   :  { %2342 = vmatprep.subr.bf16.mxu1 %v2445_v19 }
 0x35f   :  { %v2252_v15 = vpop.f32.mrb[92].mxu0 }
 0x360   :  { %v1571_v28 = vpop.f32.mrb[93].mxu0 }
 0x361   :  { %v2253_v62 = vpop.f32.mrb[94].mxu0 }
 0x362   :  { %v2346_v40 = vpack.c.bf16 %v2253_v62, %v2252_v15  ;;  %v1574_v29 = vpop.f32.mrb[95].mxu0 }
 0x363   :  { %v2343_v16 = vpack.c.bf16 %v1574_v29, %v1571_v28 }
 0x365   :  { %2344 = vmatpush3.bf16.msra.mxu1 %v2343_v16 }
 0x366   :  { %2345 = vmatprep.subr.bf16.mxu1 %v2445_v19 }
 0x369   :  { %2347 = vmatpush3.bf16.msra.mxu1 %v2346_v40 }
 0x36a   :  { %2348 = vmatprep.subr.bf16.mxu1 %v2445_v19 }
 0x36c   :  { %2287 = vmatmul.mubr.f32.vlgmr.msra.gmra.mrb[80].mxu1 %v1586_v60 }
 0x36d   :  { %2350 = vmatpush3.bf16.msra.mxu1 %v2349_v53  ;;  %2321 = vmatprep.mubr.msk.f32.mxu1 %vm2446_vm11, %v2447_v59 }
 0x36e   :  { %2351 = vmatprep.subr.bf16.mxu1 %v2445_v19 }
 0x371   :  { %2353 = vmatpush3.bf16.msra.mxu1 %v2352_v51 }
 0x372   :  { %2354 = vmatprep.subr.bf16.mxu1 %v2445_v19 }
 0x375   :  { %2356 = vmatpush3.bf16.msra.mxu1 %v2355_v5 }
 0x376   :  { %2357 = vmatprep.subr.bf16.mxu1 %v2445_v19 }
 0x379   :  { %2359 = vmatpush3.bf16.msra.mxu1 %v2358_v58 }
 0x37a   :  { %2360 = vmatprep.subr.bf16.mxu1 %v2445_v19 }
 0x37d   :  { %2362 = vmatpush3.bf16.msra.mxu1 %v2361_v10 }
 0x37e   :  { %2363 = vmatprep.subr.bf16.mxu1 %v2445_v19 }
 0x381   :  { %2365 = vmatpush3.bf16.msra.mxu1 %v2364_v24 }
 0x382   :  { %2366 = vmatprep.subr.bf16.mxu1 %v2445_v19 }
 0x385   :  { %2368 = vmatpush3.bf16.msra.mxu1 %v2367_v32 }
 0x386   :  { %2369 = vmatprep.subr.bf16.mxu1 %v2445_v19 }
 0x389   :  { %2371 = vmatpush3.bf16.msra.mxu1 %v2370_v37 }
 0x38c   :  { %2322 = vmatmul.mubr.f32.vlgmr.msra.gmra.mrb[80].mxu1 %v492_v41 }
 0x45f   :  { %v1723_v49 = vpop.f32.mrb[80].mxu1 }
 0x460   :  { %v2323_v35 = vpop.f32.mrb[81].mxu1  ;;  %1728 = vst.msk [vmem:[#allocation5] sm:$0x1] %vm1727_vm0, %v1723_v49 }
 0x461   :  { %2425 = shalt.err (!%p2422_p12)
}
 0x462   :  { %s2426_s1 = scalar_lea.hbm %s3278_s4, 16 }
 0x463   :  { %p2427_p13 = scmp.ne.s32.totalorder %s3278_s4, %s2426_s1  ;;  %p2430_p0 = scmp.lt.u32.totalorder %s2426_s1, %s3278_s4 }
 0x465   :  { %p2432_p1 = pnand %p2430_p0, %p2427_p13 }
 0x467   :  { %2435 = shalt.err (!%p2432_p1)
}
 0x468   :  { %1738 = dma.vmem_to_hbm [thread:$0]  %s1736_s23, 16, %s3278_s4, [#allocation4]  }
 0x469   :  { %2438 = dma.done.wait [#allocation4], 16  }
 0x46a   :  { %2439 = vsyncadd [#allocation4], 4294967280 }
 0x46b   :  { %1742 = vsyncpa [#allocation3], 1 }
 0x46c   :  { %1743 = vsyncpa [#allocation4], 1 }

</bundles_post_ra>
